<compile_context>
chip_gen: v5e
topology: v5e:2x2
jax: 0.10.0
libtpu: 0.0.40
codegen_flags: <defaults>
</compile_context>

<pallas_src>
import functools

import jax
import jax.numpy as jnp
from jax.experimental import pallas as pl
from jax.experimental.pallas import tpu as pltpu

_EPS_BN = 1e-5


def _round_up(x, m):
    return (x + m - 1) // m * m


# ----------------------------- Pallas kernels ------------------------------ #

def _genblock_kernel_a(offsets, x_ref, mask_ref, s1_ref, t1_ref, wA_ref, b1_ref,
                       h_ref, stats_ref):
    """Fused: BN1 affine + ReLU, 3x3 conv1 as ONE deep matmul over the
    tap-stacked operand (9*Cin_p, L), bias, and BN2 partial statistics.

    One image per grid step (lane block of size L).  Shifted views come from
    XLU lane rolls; wrap-around only touches padded / masked lanes."""
    x = x_ref[...].astype(jnp.float32)                  # (Cin_p, L)
    m = mask_ref[...]                                   # (1, L) 0/1 float mask
    L = x.shape[1]

    # BN1 affine + ReLU; multiply by mask -> exact zeros outside the image
    xb = jnp.maximum(x * s1_ref[...] + t1_ref[...], 0.0) * m

    # 3x3 conv = one matmul over the tap-stacked operand.
    taps = [xb if off == 0 else pltpu.roll(xb, shift=(-off) % L, axis=1)
            for off in offsets]
    xstk = jnp.concatenate(taps, axis=0).astype(jnp.bfloat16)   # (9*Cin_p, L)

    h = jnp.dot(wA_ref[...], xstk, preferred_element_type=jnp.float32)
    h = h + b1_ref[...]
    h_ref[...] = h.astype(h_ref.dtype)

    # BN2 partial statistics over valid pixels (packed into one tiny output).
    hv = h * m
    stats_ref[0] = jnp.concatenate(
        [jnp.sum(hv, axis=1, keepdims=True),
         jnp.sum(hv * hv, axis=1, keepdims=True)], axis=0)


def _genblock_kernel_b(offsets, h_ref, x_ref, mask_ref, s2_ref, t2_ref,
                       wB_ref, bB_ref, o_ref):
    """Fused: BN2 affine + ReLU, then 3x3 conv2 + 1x1 shortcut conv + both
    biases as ONE matmul over the stacked operand (9*Cout + Cin_p, L)."""
    h = h_ref[...].astype(jnp.float32)                  # (Cout, L)
    m = mask_ref[...]
    L = h.shape[1]

    hb = jnp.maximum(h * s2_ref[...] + t2_ref[...], 0.0) * m

    taps = [hb if off == 0 else pltpu.roll(hb, shift=(-off) % L, axis=1)
            for off in offsets]
    taps.append(x_ref[...].astype(jnp.float32))         # raw input -> shortcut
    stk = jnp.concatenate(taps, axis=0).astype(jnp.bfloat16)

    out = jnp.dot(wB_ref[...], stk, preferred_element_type=jnp.float32)
    o_ref[...] = out + bB_ref[...]


# ------------------------------ forward pass -------------------------------- #

def gen_block_forward(x_nchw, params):
    """GenBlock forward. x_nchw: (N, Cin, H, W) f32 -> (N, Cout, 2H, 2W) f32."""
    x = x_nchw.astype(jnp.float32)
    N, Cin, H, W = x.shape
    Cout = params["b1"].shape[0]
    Hu, Wu = 2 * H, 2 * W                     # upsampled spatial size
    Hp, Wp = Hu + 2, Wu + 2                   # zero-padded frame for 3x3 convs
    L0 = Hp * Wp
    L = _round_up(L0, 128)                    # lane-dense flattened length
    Cin_p = _round_up(Cin, 8)                 # pad channels to f32 sublane tile
    assert L - L0 >= Wp + 1, "zero tail must absorb roll wrap-around"
    offsets = tuple(dy * Wp + dx for dy in (-1, 0, 1) for dx in (-1, 0, 1))

    # ---- BN1: training-mode batch stats on the (small) original input ------
    mean1 = jnp.mean(x, axis=(0, 2, 3))
    var1 = jnp.mean(jnp.square(x - mean1.reshape(1, Cin, 1, 1)), axis=(0, 2, 3))
    scale1 = params["bn1_gamma"] / jnp.sqrt(var1 + _EPS_BN)
    shift1 = params["bn1_beta"] - mean1 * scale1

    # ---- nearest 2x upsample + zero pad + channels-first flat layout --------
    # TODO(synk): for large feature maps, fold the nearest upsample into kernel
    # A (or use 2x2 phase decomposition) instead of materialising the 4x tensor
    # in HBM, and tile the lane axis with a Wp+1 halo so blocks fit v7x's
    # 64 MiB VMEM.
    xu = jnp.repeat(jnp.repeat(x, 2, axis=2), 2, axis=3)          # (N,Cin,Hu,Wu)
    xp = jnp.pad(xu, ((0, 0), (0, 0), (1, 1), (1, 1)))            # (N,Cin,Hp,Wp)
    xflat = jnp.pad(xp.reshape(N, Cin, L0),
                    ((0, 0), (0, Cin_p - Cin), (0, L - L0)))      # (N,Cin_p,L)
    xflat = jnp.transpose(xflat, (1, 0, 2)).reshape(Cin_p, N * L)
    xflat = xflat.astype(jnp.bfloat16)                            # (Cin_p, N*L)

    # valid-pixel mask (same for every image), 0/1 float
    rr = jnp.arange(Hp)
    cc = jnp.arange(Wp)
    valid = ((rr >= 1) & (rr <= Hu))[:, None] & ((cc >= 1) & (cc <= Wu))[None, :]
    mask = jnp.pad(valid.reshape(1, L0).astype(jnp.float32),
                   ((0, 0), (0, L - L0)))                         # (1, L)

    # ---- weights: one stacked matrix per fused conv --------------------------
    w1t = jnp.transpose(params["w1"], (0, 2, 3, 1))               # (Cout,3,3,Cin)
    w1t = jnp.pad(w1t, ((0, 0), (0, 0), (0, 0), (0, Cin_p - Cin)))
    wA = w1t.reshape(Cout, 9 * Cin_p).astype(jnp.bfloat16)        # conv1
    w2t = jnp.transpose(params["w2"], (0, 2, 3, 1)).reshape(Cout, 9 * Cout)
    w0f = jnp.pad(params["w0"].reshape(Cout, Cin),
                  ((0, 0), (0, Cin_p - Cin)))
    wB = jnp.concatenate([w2t, w0f], axis=1).astype(jnp.bfloat16)  # conv2 + sc
    b1 = params["b1"].reshape(Cout, 1)
    bB = (params["b2"] + params["b0"]).reshape(Cout, 1)
    s1 = jnp.pad(scale1, (0, Cin_p - Cin)).reshape(Cin_p, 1)
    t1 = jnp.pad(shift1, (0, Cin_p - Cin)).reshape(Cin_p, 1)

    NL = N * L

    # ---- kernel A: BN1 + ReLU + conv1(3x3) + BN2 partial stats --------------
    cost_a = pl.CostEstimate(
        flops=2 * Cout * 9 * Cin_p * NL, transcendentals=0,
        bytes_accessed=2 * NL * (Cin_p + Cout) + 4 * N * 2 * Cout)
    h, stats = pl.pallas_call(
        functools.partial(_genblock_kernel_a, offsets),
        out_shape=(jax.ShapeDtypeStruct((Cout, NL), jnp.bfloat16),
                   jax.ShapeDtypeStruct((N, 2 * Cout, 1), jnp.float32)),
        grid=(N,),
        in_specs=[pl.BlockSpec((Cin_p, L), lambda i: (0, i)),
                  pl.BlockSpec((1, L), lambda i: (0, 0)),
                  pl.BlockSpec((Cin_p, 1), lambda i: (0, 0)),
                  pl.BlockSpec((Cin_p, 1), lambda i: (0, 0)),
                  pl.BlockSpec((Cout, 9 * Cin_p), lambda i: (0, 0)),
                  pl.BlockSpec((Cout, 1), lambda i: (0, 0))],
        out_specs=(pl.BlockSpec((Cout, L), lambda i: (0, i)),
                   pl.BlockSpec((1, 2 * Cout, 1), lambda i: (i, 0, 0))),
        compiler_params=pltpu.CompilerParams(
            dimension_semantics=("parallel",)),
        cost_estimate=cost_a,
    )(xflat, mask, s1, t1, wA, b1)

    # ---- BN2 scale/shift: Welford-style merge of per-image partials ----------
    cnt = float(Hu * Wu)                       # valid pixels per image
    ssum = stats[:, :Cout, 0]                  # (N, Cout)
    ssq = stats[:, Cout:, 0]                   # (N, Cout)
    mean_b = ssum / cnt
    m2_b = ssq - ssum * mean_b                 # per-image sum of sq. deviations
    mean2 = jnp.mean(mean_b, axis=0)
    var2 = (jnp.sum(m2_b, axis=0)
            + cnt * jnp.sum(jnp.square(mean_b - mean2[None, :]), axis=0)) \
        / (cnt * N)
    var2 = jnp.maximum(var2, 0.0)
    scale2 = params["bn2_gamma"] / jnp.sqrt(var2 + _EPS_BN)
    shift2 = params["bn2_beta"] - mean2 * scale2
    s2 = scale2.reshape(Cout, 1)
    t2 = shift2.reshape(Cout, 1)

    # ---- kernel B: BN2 + ReLU + conv2(3x3) + shortcut(1x1) + residual -------
    cost_b = pl.CostEstimate(
        flops=2 * Cout * (9 * Cout + Cin_p) * NL, transcendentals=0,
        bytes_accessed=2 * NL * (Cout + Cin_p) + 4 * NL * Cout)
    out_flat = pl.pallas_call(
        functools.partial(_genblock_kernel_b, offsets),
        out_shape=jax.ShapeDtypeStruct((Cout, NL), jnp.float32),
        grid=(N,),
        in_specs=[pl.BlockSpec((Cout, L), lambda i: (0, i)),
                  pl.BlockSpec((Cin_p, L), lambda i: (0, i)),
                  pl.BlockSpec((1, L), lambda i: (0, 0)),
                  pl.BlockSpec((Cout, 1), lambda i: (0, 0)),
                  pl.BlockSpec((Cout, 1), lambda i: (0, 0)),
                  pl.BlockSpec((Cout, 9 * Cout + Cin_p), lambda i: (0, 0)),
                  pl.BlockSpec((Cout, 1), lambda i: (0, 0))],
        out_specs=pl.BlockSpec((Cout, L), lambda i: (0, i)),
        compiler_params=pltpu.CompilerParams(
            dimension_semantics=("parallel",)),
        cost_estimate=cost_b,
    )(h, xflat, mask, s2, t2, wB, bB)

    # ---- strip spatial padding: (Cout, N*L) -> (N, Cout, Hu, Wu) -------------
    out = jnp.transpose(out_flat.reshape(Cout, N, L), (1, 0, 2))
    out = out[:, :, :L0].reshape(N, Cout, Hp, Wp)[:, :, 1:1 + Hu, 1:1 + Wu]
    return out


# ------------------------- parameter setup (glue) --------------------------- #

def _spectral_normalize(w_oihw, u, n_iter=1, eps=1e-12):
    """PyTorch-style spectral_norm: W / sigma, sigma from power iteration."""
    cout = w_oihw.shape[0]
    wmat = w_oihw.reshape(cout, -1)

    def l2n(v):
        return v / (jnp.linalg.norm(v) + eps)

    v = None
    for _ in range(n_iter):
        v = l2n(wmat.T @ u)
        u = l2n(wmat @ v)
    sigma = u @ (wmat @ v)
    return w_oihw / sigma


def _make_sn_conv_params(key, cin, cout, k):
    k1, k2, k3 = jax.random.split(key, 3)
    w = jax.random.normal(k1, (cout, cin, k, k), jnp.float32) * 0.1   # OIHW
    b = jax.random.normal(k2, (cout,), jnp.float32) * 0.1
    u = jax.random.normal(k3, (cout,), jnp.float32)
    return _spectral_normalize(w, u), b


def make_genblock_params(key, in_channels, out_channels):
    k1, k2, k3 = jax.random.split(key, 3)
    w1, b1 = _make_sn_conv_params(k1, in_channels, out_channels, 3)
    w2, b2 = _make_sn_conv_params(k2, out_channels, out_channels, 3)
    w0, b0 = _make_sn_conv_params(k3, in_channels, out_channels, 1)
    return dict(
        bn1_gamma=jnp.ones((in_channels,), jnp.float32),
        bn1_beta=jnp.zeros((in_channels,), jnp.float32),
        bn2_gamma=jnp.ones((out_channels,), jnp.float32),
        bn2_beta=jnp.zeros((out_channels,), jnp.float32),
        w1=w1, b1=b1, w2=w2, b2=b2, w0=w0, b0=b0)


# -------------------------- pure-JAX reference ------------------------------ #

def ref_forward(x, p):
    def bn(v, g, b, eps=_EPS_BN):
        m = jnp.mean(v, axis=(0, 2, 3), keepdims=True)
        var = jnp.mean(jnp.square(v - m), axis=(0, 2, 3), keepdims=True)
        return ((v - m) / jnp.sqrt(var + eps)) * g.reshape(1, -1, 1, 1) \
            + b.reshape(1, -1, 1, 1)

    def conv(v, w, b, pad):
        y = jax.lax.conv_general_dilated(
            v, w, window_strides=(1, 1),
            padding=[(pad, pad), (pad, pad)],
            dimension_numbers=("NCHW", "OIHW", "NCHW"))
        return y + b.reshape(1, -1, 1, 1)

    def up2(v):
        return jnp.repeat(jnp.repeat(v, 2, axis=2), 2, axis=3)

    x0 = x
    h = jnp.maximum(bn(x, p["bn1_gamma"], p["bn1_beta"]), 0.0)
    h = up2(h)
    h = conv(h, p["w1"], p["b1"], 1)
    h = jnp.maximum(bn(h, p["bn2_gamma"], p["bn2_beta"]), 0.0)
    h = conv(h, p["w2"], p["b2"], 1)
    x0 = conv(up2(x0), p["w0"], p["b0"], 0)
    return h + x0


# ---------------------------------- main ------------------------------------ #

if __name__ == "__main__":
    key = jax.random.PRNGKey(0)
    kx, kp = jax.random.split(key)

    N, C_in, C_out, H, W = 2, 4, 8, 16, 16
    x = jax.random.normal(kx, (N, C_in, H, W), jnp.float32)
    params = make_genblock_params(kp, C_in, C_out)

    fwd = jax.jit(gen_block_forward)
    out = jax.block_until_ready(fwd(x, params))

    ref = jax.block_until_ready(jax.jit(ref_forward)(x, params))

    assert out.shape == (N, C_out, 2 * H, 2 * W), out.shape
    max_err = float(jnp.max(jnp.abs(out - ref)))
    # bf16 matmul operands with f32 accumulation -> loosened tolerance vs f32 ref
    assert jnp.allclose(out, ref, rtol=2e-2, atol=5e-2), max_err

    print("KERNEL_OK")
</pallas_src>

<mosaic_0001>
module attributes {stable_mosaic.version = 11 : i64} {
  func.func @_genblock_kernel_a(%arg0: i32, %arg1: memref<8x1280xbf16, #tpu.memory_space<vmem>>, %arg2: memref<1x1280xf32, #tpu.memory_space<vmem>>, %arg3: memref<8x1xf32, #tpu.memory_space<vmem>>, %arg4: memref<8x1xf32, #tpu.memory_space<vmem>>, %arg5: memref<8x72xbf16, #tpu.memory_space<vmem>>, %arg6: memref<8x1xf32, #tpu.memory_space<vmem>>, %arg7: memref<8x1280xbf16, #tpu.memory_space<vmem>>, %arg8: memref<1x16x1xf32, #tpu.memory_space<vmem>>) attributes {dimension_semantics = [#tpu.dimension_semantics<parallel>], iteration_bounds = array<i64: 2>, scalar_prefetch = 0 : i64, scratch_operands = 0 : i64, tpu.core_type = #tpu.core_type<tc>, window_params = [{transform_indices = @transform_0, window_bounds = array<i64: 8, 1280>}, {pipeline_mode = #tpu.pipeline_mode<synchronous>, transform_indices = @transform_1, window_bounds = array<i64: 1, 1280>}, {pipeline_mode = #tpu.pipeline_mode<synchronous>, transform_indices = @transform_2, window_bounds = array<i64: 8, 1>}, {pipeline_mode = #tpu.pipeline_mode<synchronous>, transform_indices = @transform_3, window_bounds = array<i64: 8, 1>}, {pipeline_mode = #tpu.pipeline_mode<synchronous>, transform_indices = @transform_4, window_bounds = array<i64: 8, 72>}, {pipeline_mode = #tpu.pipeline_mode<synchronous>, transform_indices = @transform_5, window_bounds = array<i64: 8, 1>}, {transform_indices = @transform_6, window_bounds = array<i64: 8, 1280>}, {transform_indices = @transform_7, window_bounds = array<i64: 1, 16, 1>}]} {
    %c0 = arith.constant 0 : index
    %c0_0 = arith.constant 0 : index
    %0 = vector.load %arg1[%c0, %c0_0] : memref<8x1280xbf16, #tpu.memory_space<vmem>>, vector<8x1280xbf16>
    %1 = arith.extf %0 : vector<8x1280xbf16> to vector<8x1280xf32>
    %c0_1 = arith.constant 0 : index
    %c0_2 = arith.constant 0 : index
    %2 = vector.load %arg2[%c0_1, %c0_2] : memref<1x1280xf32, #tpu.memory_space<vmem>>, vector<1x1280xf32>
    %c0_3 = arith.constant 0 : index
    %c0_4 = arith.constant 0 : index
    %3 = vector.load %arg3[%c0_3, %c0_4] : memref<8x1xf32, #tpu.memory_space<vmem>>, vector<8x1xf32>
    %4 = vector.broadcast %3 : vector<8x1xf32> to vector<8x1280xf32>
    %5 = arith.mulf %1, %4 : vector<8x1280xf32>
    %c0_5 = arith.constant 0 : index
    %c0_6 = arith.constant 0 : index
    %6 = vector.load %arg4[%c0_5, %c0_6] : memref<8x1xf32, #tpu.memory_space<vmem>>, vector<8x1xf32>
    %7 = vector.broadcast %6 : vector<8x1xf32> to vector<8x1280xf32>
    %8 = arith.addf %5, %7 : vector<8x1280xf32>
    %cst = arith.constant 0.000000e+00 : f32
    %9 = vector.broadcast %cst : f32 to vector<8x1280xf32>
    %10 = arith.maximumf %8, %9 : vector<8x1280xf32>
    %11 = vector.broadcast %2 : vector<1x1280xf32> to vector<8x1280xf32>
    %12 = arith.mulf %10, %11 : vector<8x1280xf32>
    %c35_i32 = arith.constant 35 : i32
    %13 = tpu.dynamic_rotate %12 by %c35_i32 dim 1 : vector<8x1280xf32>, i32 -> vector<8x1280xf32>
    %c34_i32 = arith.constant 34 : i32
    %14 = tpu.dynamic_rotate %12 by %c34_i32 dim 1 : vector<8x1280xf32>, i32 -> vector<8x1280xf32>
    %c33_i32 = arith.constant 33 : i32
    %15 = tpu.dynamic_rotate %12 by %c33_i32 dim 1 : vector<8x1280xf32>, i32 -> vector<8x1280xf32>
    %c1_i32 = arith.constant 1 : i32
    %16 = tpu.dynamic_rotate %12 by %c1_i32 dim 1 : vector<8x1280xf32>, i32 -> vector<8x1280xf32>
    %c1279_i32 = arith.constant 1279 : i32
    %17 = tpu.dynamic_rotate %12 by %c1279_i32 dim 1 : vector<8x1280xf32>, i32 -> vector<8x1280xf32>
    %c1247_i32 = arith.constant 1247 : i32
    %18 = tpu.dynamic_rotate %12 by %c1247_i32 dim 1 : vector<8x1280xf32>, i32 -> vector<8x1280xf32>
    %c1246_i32 = arith.constant 1246 : i32
    %19 = tpu.dynamic_rotate %12 by %c1246_i32 dim 1 : vector<8x1280xf32>, i32 -> vector<8x1280xf32>
    %c1245_i32 = arith.constant 1245 : i32
    %20 = tpu.dynamic_rotate %12 by %c1245_i32 dim 1 : vector<8x1280xf32>, i32 -> vector<8x1280xf32>
    %21 = tpu.concatenate %13, %14, %15, %16, %12, %17, %18, %19, %20 in 0 : vector<8x1280xf32>, vector<8x1280xf32>, vector<8x1280xf32>, vector<8x1280xf32>, vector<8x1280xf32>, vector<8x1280xf32>, vector<8x1280xf32>, vector<8x1280xf32>, vector<8x1280xf32> -> vector<72x1280xf32>
    %22 = arith.truncf %21 : vector<72x1280xf32> to vector<72x1280xbf16>
    %c0_7 = arith.constant 0 : index
    %c0_8 = arith.constant 0 : index
    %23 = vector.load %arg5[%c0_7, %c0_8] : memref<8x72xbf16, #tpu.memory_space<vmem>>, vector<8x72xbf16>
    %cst_9 = arith.constant dense<0.000000e+00> : vector<8x1280xf32>
    %24 = tpu.matmul %23, %22, %cst_9 {dimension_numbers = #tpu.dot_dimension_numbers<[1], [0], [0], [1], [0, 0, 1, 1], [], []>} : vector<8x72xbf16>, vector<72x1280xbf16>, vector<8x1280xf32> -> vector<8x1280xf32>
    %c0_10 = arith.constant 0 : index
    %c0_11 = arith.constant 0 : index
    %25 = vector.load %arg6[%c0_10, %c0_11] : memref<8x1xf32, #tpu.memory_space<vmem>>, vector<8x1xf32>
    %26 = vector.broadcast %25 : vector<8x1xf32> to vector<8x1280xf32>
    %27 = arith.addf %24, %26 : vector<8x1280xf32>
    %28 = arith.truncf %27 : vector<8x1280xf32> to vector<8x1280xbf16>
    %c0_12 = arith.constant 0 : index
    %c0_13 = arith.constant 0 : index
    %29 = vector.load %arg7[%c0_12, %c0_13] : memref<8x1280xbf16, #tpu.memory_space<vmem>>, vector<8x1280xbf16>
    tpu.vector_store %arg7[%c0_12, %c0_13], %28 {strides = array<i32>} : memref<8x1280xbf16, #tpu.memory_space<vmem>>, vector<8x1280xbf16>,
    %30 = vector.broadcast %2 : vector<1x1280xf32> to vector<8x1280xf32>
    %31 = arith.mulf %27, %30 : vector<8x1280xf32>
    %cst_14 = arith.constant dense<0.000000e+00> : vector<8xf32>
    %32 = vector.multi_reduction <add>, %31, %cst_14 [1] : vector<8x1280xf32> to vector<8xf32>
    %33 = vector.shape_cast %32 : vector<8xf32> to vector<8x1xf32>
    %34 = arith.mulf %31, %31 : vector<8x1280xf32>
    %cst_15 = arith.constant dense<0.000000e+00> : vector<8xf32>
    %35 = vector.multi_reduction <add>, %34, %cst_15 [1] : vector<8x1280xf32> to vector<8xf32>
    %36 = vector.shape_cast %35 : vector<8xf32> to vector<8x1xf32>
    %37 = tpu.concatenate %33, %36 in 0 : vector<8x1xf32>, vector<8x1xf32> -> vector<16x1xf32>
    %c0_16 = arith.constant 0 : index
    %c0_17 = arith.constant 0 : index
    %c0_18 = arith.constant 0 : index
    %38 = vector.load %arg8[%c0_16, %c0_17, %c0_18] : memref<1x16x1xf32, #tpu.memory_space<vmem>>, vector<1x16x1xf32>
    %39 = vector.shape_cast %38 : vector<1x16x1xf32> to vector<16x1xf32>
    %40 = vector.shape_cast %37 : vector<16x1xf32> to vector<1x16x1xf32>
    tpu.vector_store %arg8[%c0_16, %c0_17, %c0_18], %40 {strides = array<i32>} : memref<1x16x1xf32, #tpu.memory_space<vmem>>, vector<1x16x1xf32>,
    return
  }
  func.func @transform_0(%arg0: i32) -> (i32, i32) {
    %c0_i32 = arith.constant 0 : i32
    %c0_i32_0 = arith.constant 0 : i32
    return %c0_i32, %arg0 : i32, i32
  }
  func.func @transform_1(%arg0: i32) -> (i32, i32) {
    %c0_i32 = arith.constant 0 : i32
    %c0_i32_0 = arith.constant 0 : i32
    %c0_i32_1 = arith.constant 0 : i32
    return %c0_i32, %c0_i32_0 : i32, i32
  }
  func.func @transform_2(%arg0: i32) -> (i32, i32) {
    %c0_i32 = arith.constant 0 : i32
    %c0_i32_0 = arith.constant 0 : i32
    %c0_i32_1 = arith.constant 0 : i32
    return %c0_i32, %c0_i32_0 : i32, i32
  }
  func.func @transform_3(%arg0: i32) -> (i32, i32) {
    %c0_i32 = arith.constant 0 : i32
    %c0_i32_0 = arith.constant 0 : i32
    %c0_i32_1 = arith.constant 0 : i32
    return %c0_i32, %c0_i32_0 : i32, i32
  }
  func.func @transform_4(%arg0: i32) -> (i32, i32) {
    %c0_i32 = arith.constant 0 : i32
    %c0_i32_0 = arith.constant 0 : i32
    %c0_i32_1 = arith.constant 0 : i32
    return %c0_i32, %c0_i32_0 : i32, i32
  }
  func.func @transform_5(%arg0: i32) -> (i32, i32) {
    %c0_i32 = arith.constant 0 : i32
    %c0_i32_0 = arith.constant 0 : i32
    %c0_i32_1 = arith.constant 0 : i32
    return %c0_i32, %c0_i32_0 : i32, i32
  }
  func.func @transform_6(%arg0: i32) -> (i32, i32) {
    %c0_i32 = arith.constant 0 : i32
    %c0_i32_0 = arith.constant 0 : i32
    return %c0_i32, %arg0 : i32, i32
  }
  func.func @transform_7(%arg0: i32) -> (i32, i32, i32) {
    %c0_i32 = arith.constant 0 : i32
    %c0_i32_0 = arith.constant 0 : i32
    %c0_i32_1 = arith.constant 0 : i32
    return %arg0, %c0_i32, %c0_i32_0 : i32, i32, i32
  }
}

module attributes {stable_mosaic.version = 11 : i64} {
  func.func @_genblock_kernel_b(%arg0: i32, %arg1: memref<8x1280xbf16, #tpu.memory_space<vmem>>, %arg2: memref<8x1280xbf16, #tpu.memory_space<vmem>>, %arg3: memref<1x1280xf32, #tpu.memory_space<vmem>>, %arg4: memref<8x1xf32, #tpu.memory_space<vmem>>, %arg5: memref<8x1xf32, #tpu.memory_space<vmem>>, %arg6: memref<8x80xbf16, #tpu.memory_space<vmem>>, %arg7: memref<8x1xf32, #tpu.memory_space<vmem>>, %arg8: memref<8x1280xf32, #tpu.memory_space<vmem>>) attributes {dimension_semantics = [#tpu.dimension_semantics<parallel>], iteration_bounds = array<i64: 2>, scalar_prefetch = 0 : i64, scratch_operands = 0 : i64, tpu.core_type = #tpu.core_type<tc>, window_params = [{transform_indices = @transform_0, window_bounds = array<i64: 8, 1280>}, {transform_indices = @transform_1, window_bounds = array<i64: 8, 1280>}, {pipeline_mode = #tpu.pipeline_mode<synchronous>, transform_indices = @transform_2, window_bounds = array<i64: 1, 1280>}, {pipeline_mode = #tpu.pipeline_mode<synchronous>, transform_indices = @transform_3, window_bounds = array<i64: 8, 1>}, {pipeline_mode = #tpu.pipeline_mode<synchronous>, transform_indices = @transform_4, window_bounds = array<i64: 8, 1>}, {pipeline_mode = #tpu.pipeline_mode<synchronous>, transform_indices = @transform_5, window_bounds = array<i64: 8, 80>}, {pipeline_mode = #tpu.pipeline_mode<synchronous>, transform_indices = @transform_6, window_bounds = array<i64: 8, 1>}, {transform_indices = @transform_7, window_bounds = array<i64: 8, 1280>}]} {
    %c0 = arith.constant 0 : index
    %c0_0 = arith.constant 0 : index
    %0 = vector.load %arg1[%c0, %c0_0] : memref<8x1280xbf16, #tpu.memory_space<vmem>>, vector<8x1280xbf16>
    %1 = arith.extf %0 : vector<8x1280xbf16> to vector<8x1280xf32>
    %c0_1 = arith.constant 0 : index
    %c0_2 = arith.constant 0 : index
    %2 = vector.load %arg3[%c0_1, %c0_2] : memref<1x1280xf32, #tpu.memory_space<vmem>>, vector<1x1280xf32>
    %c0_3 = arith.constant 0 : index
    %c0_4 = arith.constant 0 : index
    %3 = vector.load %arg4[%c0_3, %c0_4] : memref<8x1xf32, #tpu.memory_space<vmem>>, vector<8x1xf32>
    %4 = vector.broadcast %3 : vector<8x1xf32> to vector<8x1280xf32>
    %5 = arith.mulf %1, %4 : vector<8x1280xf32>
    %c0_5 = arith.constant 0 : index
    %c0_6 = arith.constant 0 : index
    %6 = vector.load %arg5[%c0_5, %c0_6] : memref<8x1xf32, #tpu.memory_space<vmem>>, vector<8x1xf32>
    %7 = vector.broadcast %6 : vector<8x1xf32> to vector<8x1280xf32>
    %8 = arith.addf %5, %7 : vector<8x1280xf32>
    %cst = arith.constant 0.000000e+00 : f32
    %9 = vector.broadcast %cst : f32 to vector<8x1280xf32>
    %10 = arith.maximumf %8, %9 : vector<8x1280xf32>
    %11 = vector.broadcast %2 : vector<1x1280xf32> to vector<8x1280xf32>
    %12 = arith.mulf %10, %11 : vector<8x1280xf32>
    %c35_i32 = arith.constant 35 : i32
    %13 = tpu.dynamic_rotate %12 by %c35_i32 dim 1 : vector<8x1280xf32>, i32 -> vector<8x1280xf32>
    %c34_i32 = arith.constant 34 : i32
    %14 = tpu.dynamic_rotate %12 by %c34_i32 dim 1 : vector<8x1280xf32>, i32 -> vector<8x1280xf32>
    %c33_i32 = arith.constant 33 : i32
    %15 = tpu.dynamic_rotate %12 by %c33_i32 dim 1 : vector<8x1280xf32>, i32 -> vector<8x1280xf32>
    %c1_i32 = arith.constant 1 : i32
    %16 = tpu.dynamic_rotate %12 by %c1_i32 dim 1 : vector<8x1280xf32>, i32 -> vector<8x1280xf32>
    %c1279_i32 = arith.constant 1279 : i32
    %17 = tpu.dynamic_rotate %12 by %c1279_i32 dim 1 : vector<8x1280xf32>, i32 -> vector<8x1280xf32>
    %c1247_i32 = arith.constant 1247 : i32
    %18 = tpu.dynamic_rotate %12 by %c1247_i32 dim 1 : vector<8x1280xf32>, i32 -> vector<8x1280xf32>
    %c1246_i32 = arith.constant 1246 : i32
    %19 = tpu.dynamic_rotate %12 by %c1246_i32 dim 1 : vector<8x1280xf32>, i32 -> vector<8x1280xf32>
    %c1245_i32 = arith.constant 1245 : i32
    %20 = tpu.dynamic_rotate %12 by %c1245_i32 dim 1 : vector<8x1280xf32>, i32 -> vector<8x1280xf32>
    %c0_7 = arith.constant 0 : index
    %c0_8 = arith.constant 0 : index
    %21 = vector.load %arg2[%c0_7, %c0_8] : memref<8x1280xbf16, #tpu.memory_space<vmem>>, vector<8x1280xbf16>
    %22 = arith.extf %21 : vector<8x1280xbf16> to vector<8x1280xf32>
    %23 = tpu.concatenate %13, %14, %15, %16, %12, %17, %18, %19, %20, %22 in 0 : vector<8x1280xf32>, vector<8x1280xf32>, vector<8x1280xf32>, vector<8x1280xf32>, vector<8x1280xf32>, vector<8x1280xf32>, vector<8x1280xf32>, vector<8x1280xf32>, vector<8x1280xf32>, vector<8x1280xf32> -> vector<80x1280xf32>
    %24 = arith.truncf %23 : vector<80x1280xf32> to vector<80x1280xbf16>
    %c0_9 = arith.constant 0 : index
    %c0_10 = arith.constant 0 : index
    %25 = vector.load %arg6[%c0_9, %c0_10] : memref<8x80xbf16, #tpu.memory_space<vmem>>, vector<8x80xbf16>
    %cst_11 = arith.constant dense<0.000000e+00> : vector<8x1280xf32>
    %26 = tpu.matmul %25, %24, %cst_11 {dimension_numbers = #tpu.dot_dimension_numbers<[1], [0], [0], [1], [0, 0, 1, 1], [], []>} : vector<8x80xbf16>, vector<80x1280xbf16>, vector<8x1280xf32> -> vector<8x1280xf32>
    %c0_12 = arith.constant 0 : index
    %c0_13 = arith.constant 0 : index
    %27 = vector.load %arg7[%c0_12, %c0_13] : memref<8x1xf32, #tpu.memory_space<vmem>>, vector<8x1xf32>
    %28 = vector.broadcast %27 : vector<8x1xf32> to vector<8x1280xf32>
    %29 = arith.addf %26, %28 : vector<8x1280xf32>
    %c0_14 = arith.constant 0 : index
    %c0_15 = arith.constant 0 : index
    %30 = vector.load %arg8[%c0_14, %c0_15] : memref<8x1280xf32, #tpu.memory_space<vmem>>, vector<8x1280xf32>
    tpu.vector_store %arg8[%c0_14, %c0_15], %29 {strides = array<i32>} : memref<8x1280xf32, #tpu.memory_space<vmem>>, vector<8x1280xf32>,
    return
  }
  func.func @transform_0(%arg0: i32) -> (i32, i32) {
    %c0_i32 = arith.constant 0 : i32
    %c0_i32_0 = arith.constant 0 : i32
    return %c0_i32, %arg0 : i32, i32
  }
  func.func @transform_1(%arg0: i32) -> (i32, i32) {
    %c0_i32 = arith.constant 0 : i32
    %c0_i32_0 = arith.constant 0 : i32
    return %c0_i32, %arg0 : i32, i32
  }
  func.func @transform_2(%arg0: i32) -> (i32, i32) {
    %c0_i32 = arith.constant 0 : i32
    %c0_i32_0 = arith.constant 0 : i32
    %c0_i32_1 = arith.constant 0 : i32
    return %c0_i32, %c0_i32_0 : i32, i32
  }
  func.func @transform_3(%arg0: i32) -> (i32, i32) {
    %c0_i32 = arith.constant 0 : i32
    %c0_i32_0 = arith.constant 0 : i32
    %c0_i32_1 = arith.constant 0 : i32
    return %c0_i32, %c0_i32_0 : i32, i32
  }
  func.func @transform_4(%arg0: i32) -> (i32, i32) {
    %c0_i32 = arith.constant 0 : i32
    %c0_i32_0 = arith.constant 0 : i32
    %c0_i32_1 = arith.constant 0 : i32
    return %c0_i32, %c0_i32_0 : i32, i32
  }
  func.func @transform_5(%arg0: i32) -> (i32, i32) {
    %c0_i32 = arith.constant 0 : i32
    %c0_i32_0 = arith.constant 0 : i32
    %c0_i32_1 = arith.constant 0 : i32
    return %c0_i32, %c0_i32_0 : i32, i32
  }
  func.func @transform_6(%arg0: i32) -> (i32, i32) {
    %c0_i32 = arith.constant 0 : i32
    %c0_i32_0 = arith.constant 0 : i32
    %c0_i32_1 = arith.constant 0 : i32
    return %c0_i32, %c0_i32_0 : i32, i32
  }
  func.func @transform_7(%arg0: i32) -> (i32, i32) {
    %c0_i32 = arith.constant 0 : i32
    %c0_i32_0 = arith.constant 0 : i32
    return %c0_i32, %arg0 : i32, i32
  }
}

</mosaic_0001>

<bundles_post_ra>
// kernel: gen_block_forward.2
= control target key start
LH: loop header
LB: loop body
LE: loop exit
PB: predicated region body
PF: predicated region fallthrough
CT: control target
= control target key end

     0   :  { %s1276_s24 = smov 0   ;;  %s1935_s0 = inlined_call_operand.vmem [shape: bf16[8,2560], index: 0, kind: input, shape index: {}]   ;;  %s1936_s1 = inlined_call_operand.vmem [shape: f32[1,1280], index: 1, kind: input, shape index: {}]   ;;  %s1937_s2 = inlined_call_operand.vmem [shape: f32[8,1], index: 2, kind: input, shape index: {}]   ;;  %s1938_s3 = inlined_call_operand.vmem [shape: f32[8,1], index: 3, kind: input, shape index: {}]   ;;  %s1939_s4 = inlined_call_operand.vmem [shape: bf16[8,72], index: 4, kind: input, shape index: {}]   ;;  %s1940_s5 = inlined_call_operand.vmem [shape: f32[8,1], index: 5, kind: input, shape index: {}]   ;;  %s1941_s6 = inlined_call_operand.vmem [shape: bf16[8,2560], index: 6, kind: output, shape index: {0}]   ;;  %s1942_s7 = inlined_call_operand.vmem [shape: f32[2,16,1], index: 7, kind: output, shape index: {1}]  }
   0x1 LB: > { %s1282_s25 = sadd.s32 4294967295, %s1225_s24   ;;  %p1007_p0 = scmp.ge.s32.totalorder %s1225_s24, 1  ;;  %s1225_s24 = sphi %s1276_s24, %s18_s24  }
   0x2   : > { %p241_p1 = scmp.lt.s32.totalorder %s1225_s24, 3 }
   0x4   : > { %p242_p2 = pnand %p1007_p0, %p241_p1 }
   0x5   : > { %s278_s30 = smul.u32 (!%p242_p2), 10, %s1282_s25  ;;  %s1228_s14 = smov (!%p242_p2), 95  }
   0x6   : > { %245 = sbr.rel (%p242_p2) target bundleno = 639 (0x27f), region = 44  ;;  %s1229_s15 = smov (!%p242_p2), 93  }
   0x7   : > { %p279_p3 = scmp.lt.s32.totalorder (!%p242_p2), %s278_s30, 19  ;;  %s1230_s18 = smov (!%p242_p2), 127  }
   0x8   : > { %s1231_s19 = smov (!%p242_p2), 94   ;;  %s1232_s20 = smov (!%p242_p2), 1  }
   0x9   : > { %s1233_s21 = smov (!%p242_p2), 33   ;;  %s1234_s22 = smov (!%p242_p2), 34  }
   0xa   : > { %s1235_s23 = smov (!%p242_p2), 35   ;;  %p290_p4 = scmp.lt.s32.totalorder (!%p242_p2), %s1282_s25, 1 }
   0xb   : > { %v313_v0 = vld [vmem:[%s1937_s2] sm:$0xff]  ;;  %v1227_v1 = vmov 0   ;;  %s1956_s30 = smov (!%p279_p3, %s278_s30), 19  ;;  %v1361_v43 = vld [vmem:[%s1936_s1 + $0x8] sm:$0x3]  ;;  %vm698_vm2 = vcmask 1043456  }
   0xc   : > { %1042 = vset.pattern.permute.xlu0 %v1227_v1  ;;  %1218 = vset.pattern.permute.xlu2 %v1227_v1  ;;  %v329_v2 = vld [vmem:[%s1938_s3] sm:$0xff]  ;;  %s1008_s8 = sshll.u32 %s1956_s30, 2  ;;  %v1943_v49 = vperm.slane %v1361_v43, 1  ;;  %vm694_vm9 = vcmask 588800   ;;  %s1958_s25 = smov (!%p290_p4, %s1282_s25), 1  ;;  %vm911_vm10 = vcmask 7168  }
   0xd   : > { %316 = vperm.xlu0 %1042, %v313_v0   ;;  %s1301_s11 = scalar_lea.vmem %s1935_s0, %s1008_s8  ;;  %v1314_v14 = vld [vmem:[%s1936_s1] sm:$0xff]  ;;  %s1024_s30 = sshll.u32 %s1958_s25, 4 }
   0xe   : > { %v296_v4 = vld [vmem:[%s1301_s11] sm:$0xff]  ;;  %v297_v5 = vld [vmem:[%s1301_s11 + $0x8] sm:$0xff]  ;;  %v298_v20 = vld [vmem:[%s1301_s11 + $0x10] sm:$0xff]  ;;  %v357_v22 = vperm.slane %v1314_v14, 0  ;;  %v358_v23 = vperm.slane %v1314_v14, 1  ;;  %v359_v24 = vperm.slane %v1314_v14, 2  ;;  %s294_s13 = scalar_lea.vmem %s1942_s7, %s1024_s30 }
   0xf   : > { %v301_v6 = vunpack.c.l.bf16 %v296_v4  ;;  %v302_v7 = vunpack.c.h.bf16 %v296_v4  ;;  %v303_v8 = vunpack.c.l.bf16 %v297_v5  ;;  %v304_v9 = vunpack.c.h.bf16 %v297_v5  ;;  %v1324_v21 = vld [vmem:[%s1301_s11 + $0x20] sm:$0xff]  ;;  %v299_v58 = vld [vmem:[%s1301_s11 + $0x18] sm:$0xff]  ;;  %s1900_s11 = scalar_lea.vmem %s1941_s6, %s1008_s8 }
  0x10   : > { %v360_v25 = vperm.slane %v1314_v14, 3  ;;  %v305_v30 = vunpack.c.l.bf16 %v298_v20  ;;  %v306_v31 = vunpack.c.h.bf16 %v298_v20  ;;  %v310_v32 = vunpack.c.h.bf16 %v1324_v21 }
  0x11   : > { %v1948_v47 = vperm.slane %v1314_v14, 4  ;;  %v1947_v48 = vperm.slane %v1314_v14, 5  ;;  %v307_v59 = vunpack.c.l.bf16 %v299_v58  ;;  %v308_v60 = vunpack.c.h.bf16 %v299_v58 }
  0x12   : > { %v309_v1 = vunpack.c.l.bf16 %v1324_v21  ;;  %v1945_v4 = vperm.slane %v1314_v14, 7  ;;  %v407_v21 = vlaneseq }
  0x15   : > { %332 = vperm.xlu0 %1042, %v329_v2   ;;  %v1946_v2 = vperm.slane %v1314_v14, 6 }
  0x7f   : > { %v1303_v3 = vpop.permute.xlu0 %316 }
  0x80   : > { %v319_v10 = vmul.f32 %v1303_v3, %v301_v6  ;;  %v320_v11 = vmul.f32 %v1303_v3, %v302_v7  ;;  %v321_v12 = vmul.f32 %v1303_v3, %v303_v8  ;;  %v322_v13 = vmul.f32 %v1303_v3, %v304_v9 }
  0x81   : > { %v323_v39 = vmul.f32 %v1303_v3, %v305_v30  ;;  %v324_v40 = vmul.f32 %v1303_v3, %v306_v31  ;;  %v328_v41 = vmul.f32 %v1303_v3, %v310_v32  ;;  %v325_v61 = vmul.f32 %v1303_v3, %v307_v59 }
  0x82   : > { %v326_v62 = vmul.f32 %v1303_v3, %v308_v60  ;;  %v327_v7 = vmul.f32 %v1303_v3, %v309_v1  ;;  %v1944_v3 = vperm.slane %v1361_v43, 0 }
  0x87   : > { %v1316_v15 = vpop.permute.xlu0 %332 }
  0x88   : > { %v335_v16 = vadd.f32 %v1316_v15, %v319_v10  ;;  %v336_v17 = vadd.f32 %v1316_v15, %v320_v11  ;;  %v337_v18 = vadd.f32 %v1316_v15, %v321_v12  ;;  %v338_v19 = vadd.f32 %v1316_v15, %v322_v13 }
  0x89   : > { %v339_v42 = vadd.f32 %v1316_v15, %v323_v39  ;;  %v340_v44 = vadd.f32 %v1316_v15, %v324_v40  ;;  %v344_v45 = vadd.f32 %v1316_v15, %v328_v41  ;;  %v341_v63 = vadd.f32 %v1316_v15, %v325_v61 }
  0x8a   : > { %v345_v26 = vmax.f32 %v335_v16, 0.0  ;;  %v346_v27 = vmax.f32 %v336_v17, 0.0  ;;  %v347_v28 = vmax.f32 %v337_v18, 0.0  ;;  %v348_v29 = vmax.f32 %v338_v19, 0.0 }
  0x8b   : > { %v349_v46 = vmax.f32 %v339_v42, 0.0  ;;  %v350_v50 = vmax.f32 %v340_v44, 0.0  ;;  %v354_v51 = vmax.f32 %v344_v45, 0.0  ;;  %v342_v0 = vadd.f32 %v1316_v15, %v326_v62 }
  0x8c   : > { %v1333_v33 = vmul.f32 %v357_v22, %v345_v26  ;;  %v1337_v34 = vmul.f32 %v358_v23, %v346_v27  ;;  %v1341_v35 = vmul.f32 %v359_v24, %v347_v28  ;;  %v1345_v36 = vmul.f32 %v360_v25, %v348_v29 }
  0x8d   : > { %v1373_v52 = vmul.f32 %v1948_v47, %v349_v46  ;;  %v1377_v53 = vmul.f32 %v1947_v48, %v350_v50  ;;  %v1381_v54 = vmul.f32 %v1943_v49, %v354_v51  ;;  %v351_v5 = vmax.f32 %v341_v63, 0.0 }
  0x8e   : > { %v1063_v37 = vpack.i.bf16 %v1345_v36, %v1341_v35  ;;  %v1053_v38 = vpack.i.bf16 %v1337_v34, %v1333_v33  ;;  %v1108_v57 = vpack.i.bf16 %v1341_v35, %v1337_v34  ;;  %v352_v6 = vmax.f32 %v342_v0, 0.0 }
  0x8f   : > { %v1093_v55 = vpack.i.bf16 %v1381_v54, %v1333_v33  ;;  %v1073_v56 = vpack.i.bf16 %v1377_v53, %v1373_v52  ;;  %v343_v8 = vadd.f32 %v1316_v15, %v327_v7  ;;  %v1413_v9 = vmul.f32 %v1946_v2, %v351_v5 }
  0x90   : > { %1064 = vrot.lane.b32.xlu0 %v1063_v37, %s1228_s14  ;;  %1054 = vrot.lane.b32.xlu2 %v1053_v38, %s1228_s14  ;;  %v1417_v10 = vmul.f32 %v1945_v4, %v352_v6  ;;  %v1153_v12 = vpack.i.bf16 %v1373_v52, %v1345_v36  ;;  %v1479_v29 = vand.u32 127, %v407_v21 }
  0x91   : > { %1044 = vrot.lane.b32.xlu1 %v1053_v38, %s1229_s15  ;;  %v353_v11 = vmax.f32 %v343_v8, 0.0  ;;  %v1198_v17 = vpack.i.bf16 %v1413_v9, %v1377_v53 }
  0x92   : > { %v1133_v13 = vpack.i.bf16 %v1417_v10, %v1413_v9  ;;  %vm626_vm0 = vcmp.lt.s32.totalorder %v1479_v29, 93  ;;  %vm595_vm1 = vcmp.lt.s32.totalorder %v1479_v29, 94  ;;  %vm564_vm3 = vcmp.lt.s32.totalorder %v1479_v29, 95 }
  0x93   : > { %v1429_v15 = vmul.f32 %v1944_v3, %v353_v11  ;;  %vm533_vm4 = vcmp.lt.s32.totalorder %v1479_v29, 127  ;;  %vm471_vm5 = vcmp.lt.s32.totalorder %v1479_v29, 33  ;;  %vm502_vm6 = vcmp.lt.s32.totalorder %v1479_v29, 1 }
  0x94   : > { %vm409_vm7 = vcmp.lt.s32.totalorder %v1479_v29, 35  ;;  %vm440_vm8 = vcmp.lt.s32.totalorder %v1479_v29, 34 }
  0x95   : > { %v1168_v16 = vpack.i.bf16 %v1381_v54, %v1429_v15 }
  0x98   : > { %1079 = vrot.lane.b32.xlu0 %v1053_v38, %s1230_s18  ;;  %1059 = vrot.lane.b32.xlu2 %v1053_v38, %s1231_s19 }
  0x99   : > { %1049 = vrot.lane.b32.xlu1 %v1063_v37, %s1229_s15 }
  0xa0   : > { %1094 = vrot.lane.b32.xlu0 %v1093_v55, %s1232_s20  ;;  %1074 = vrot.lane.b32.xlu2 %v1073_v56, %s1229_s15 }
  0xa1   : > { %1069 = vrot.lane.b32.xlu1 %v1063_v37, %s1231_s19 }
  0xa8   : > { %1109 = vrot.lane.b32.xlu0 %v1108_v57, %s1233_s21  ;;  %1089 = vrot.lane.b32.xlu2 %v1093_v55, %s1233_s21 }
  0xa9   : > { %1084 = vrot.lane.b32.xlu1 %v1063_v37, %s1230_s18 }
  0xb0   : > { %1124 = vrot.lane.b32.xlu0 %v1093_v55, %s1234_s22  ;;  %1104 = vrot.lane.b32.xlu2 %v1073_v56, %s1231_s19 }
  0xb1   : > { %1099 = vrot.lane.b32.xlu1 %v1073_v56, %s1228_s14 }
  0xb8   : > { %1139 = vrot.lane.b32.xlu0 %v1108_v57, %s1235_s23  ;;  %1119 = vrot.lane.b32.xlu2 %v1093_v55, %s1235_s23 }
  0xb9   : > { %1114 = vrot.lane.b32.xlu1 %v1108_v57, %s1232_s20 }
  0xc0   : > { %1154 = vrot.lane.b32.xlu0 %v1153_v12, %s1232_s20  ;;  %1134 = vrot.lane.b32.xlu2 %v1133_v13, %s1229_s15 }
  0xc1   : > { %1129 = vrot.lane.b32.xlu1 %v1073_v56, %s1230_s18 }
  0xc8   : > { %1169 = vrot.lane.b32.xlu0 %v1168_v16, %s1229_s15  ;;  %1149 = vrot.lane.b32.xlu2 %v1153_v12, %s1233_s21 }
  0xc9   : > { %1144 = vrot.lane.b32.xlu1 %v1108_v57, %s1234_s22 }
  0xd0   : > { %1184 = vrot.lane.b32.xlu0 %v1133_v13, %s1230_s18  ;;  %1164 = vrot.lane.b32.xlu2 %v1133_v13, %s1231_s19 }
  0xd1   : > { %1159 = vrot.lane.b32.xlu1 %v1133_v13, %s1228_s14 }
  0xd8   : > { %1199 = vrot.lane.b32.xlu0 %v1198_v17, %s1233_s21  ;;  %1179 = vrot.lane.b32.xlu2 %v1153_v12, %s1234_s22 }
  0xd9   : > { %1174 = vrot.lane.b32.xlu1 %v1153_v12, %s1235_s23 }
  0xe0   : > { %1209 = vrot.lane.b32.xlu0 %v1198_v17, %s1235_s23  ;;  %1194 = vrot.lane.b32.xlu2 %v1168_v16, %s1231_s19 }
  0xe1   : > { %1189 = vrot.lane.b32.xlu1 %v1168_v16, %s1228_s14 }
  0xe8   : > { %496 = vrot.lane.b32.xlu0 %v1417_v10, %s1232_s20  ;;  %529 = vrot.lane.b32.xlu2 %v1429_v15, %s1230_s18 }
  0xe9   : > { %1204 = vrot.lane.b32.xlu1 %v1198_v17, %s1232_s20 }
  0xea   : > { %v1452_v18 = vpop.permute.xlu2 %1054 }
  0xeb   : > { %v1057_v39 = vunpack.i.h.bf16 %v1452_v18  ;;  %v1056_v40 = vunpack.i.l.bf16 %v1452_v18 }
  0xed   : > { %v573_v55 = vsel %vm564_vm3, %v1056_v40, %v1057_v39 }
  0xf0   : > { %531 = vrot.lane.b32.xlu0 %v1381_v54, %s1230_s18  ;;  %465 = vrot.lane.b32.xlu2 %v1417_v10, %s1233_s21 }
  0xf1   : > { %1214 = vrot.lane.b32.xlu1 %v1198_v17, %s1234_s22 }
  0xf2   : > { %v1459_v19 = vpop.permute.xlu2 %1059 }
  0xf3   : > { %v1062_v32 = vunpack.i.h.bf16 %v1459_v19  ;;  %v1061_v37 = vunpack.i.l.bf16 %v1459_v19 }
  0xf5   : > { %v604_v44 = vsel %vm595_vm1, %v1061_v37, %v1062_v32 }
  0xf6   : > { %v667_v60 = vpack.c.bf16 %v604_v44, %v573_v55 }
  0xf8   : > { %403 = vrot.lane.b32.xlu0 %v1429_v15, %s1235_s23  ;;  %434 = vrot.lane.b32.xlu2 %v1417_v10, %s1234_s22 }
  0xf9   : > { %401 = vrot.lane.b32.xlu1 %v1417_v10, %s1235_s23 }
  0xfa   : > { %v1467_v20 = vpop.permute.xlu2 %1074 }
  0xfb   : > { %v1076_v56 = vunpack.i.l.bf16 %v1467_v20 }
 0x100   : > { %498 = vrot.lane.b32.xlu2 %v1429_v15, %s1232_s20 }
 0x101   : > { %467 = vrot.lane.b32.xlu1 %v1429_v15, %s1233_s21 }
 0x102   : > { %v1473_v26 = vpop.permute.xlu0 %1064  ;;  %v1475_v27 = vpop.permute.xlu2 %1089 }
 0x103   : > { %v1477_v28 = vpop.permute.xlu1 %1044  ;;  %v1066_v8 = vunpack.i.l.bf16 %v1473_v26  ;;  %v1092_v11 = vunpack.i.h.bf16 %v1475_v27  ;;  %v1091_v12 = vunpack.i.l.bf16 %v1475_v27  ;;  %v1067_v17 = vunpack.i.h.bf16 %v1473_v26 }
 0x104   : > { %v1047_v30 = vunpack.i.h.bf16 %v1477_v28  ;;  %v1046_v31 = vunpack.i.l.bf16 %v1477_v28 }
 0x105   : > { %v481_v26 = vsel %vm471_vm5, %v1092_v11, %v1091_v12  ;;  %v572_v55 = vsel %vm564_vm3, %v1057_v39, %v1066_v8 }
 0x106   : > { %v635_v38 = vsel %vm626_vm0, %v1046_v31, %v1047_v30 }
 0x107   : > { %v677_v41 = vpack.c.bf16 %v635_v38, %v635_v38 }
 0x109   : > { %436 = vrot.lane.b32.xlu1 %v1429_v15, %s1234_s22  ;;  %v700_v42 = vsel %vm698_vm2, %v677_v41, 0 }
 0x10a   : > { %732 = vmatpush.bf16.msra.mxu0 %v700_v42  ;;  %v1501_v45 = vpop.permute.xlu0 %1079  ;;  %v1511_v57 = vpop.permute.xlu2 %1104 }
 0x10b   : > { %v1082_v46 = vunpack.i.h.bf16 %v1501_v45  ;;  %v1081_v50 = vunpack.i.l.bf16 %v1501_v45  ;;  %v1050_v51 = vpop.permute.xlu1 %1049 }
 0x10c   : > { %v1052_v58 = vunpack.i.h.bf16 %v1050_v51  ;;  %v1051_v59 = vunpack.i.l.bf16 %v1050_v51 }
 0x10d   : > { %v542_v61 = vsel %vm533_vm4, %v1081_v50, %v1082_v46 }
 0x10e   : > { %733 = vmatpush.bf16.msra.mxu0 %v667_v60  ;;  %v657_v62 = vpack.c.bf16 %v542_v61, %v1333_v33  ;;  %v634_v63 = vsel %vm626_vm0, %v1047_v30, %v1051_v59  ;;  %v633_v0 = vsel %vm626_vm0, %v1051_v59, %v1052_v58  ;;  %v632_v1 = vsel %vm626_vm0, %v1052_v58, %v1076_v56 }
 0x10f   : > { %v678_v5 = vpack.c.bf16 %v634_v63, %v634_v63  ;;  %v679_v6 = vpack.c.bf16 %v633_v0, %v633_v0  ;;  %v680_v7 = vpack.c.bf16 %v632_v1, %v632_v1  ;;  %v571_v61 = vsel %vm564_vm3, %v1066_v8, %v1067_v17 }
 0x111   : > { %v703_v33 = vsel %vm698_vm2, %v678_v5, 0  ;;  %v706_v13 = vsel %vm698_vm2, %v679_v6, 0  ;;  %v709_v16 = vsel %vm698_vm2, %v680_v7, 0 }
 0x112   : > { %734 = vmatpush.bf16.msra.mxu0 %v657_v62  ;;  %745 = vmatpush.bf16.msra.mxu1 %v703_v33  ;;  %v1531_v21 = vpop.permute.xlu0 %1094  ;;  %v1551_v58 = vpop.permute.xlu2 %1119 }
 0x113   : > { %758 = vmatpush.bf16.msra.mxu2 %v706_v13  ;;  %771 = vmatpush.bf16.msra.mxu3 %v709_v16  ;;  %v1097_v30 = vunpack.i.h.bf16 %v1531_v21  ;;  %v1096_v38 = vunpack.i.l.bf16 %v1531_v21  ;;  %v1070_v41 = vpop.permute.xlu1 %1069 }
 0x114   : > { %v1072_v42 = vunpack.i.h.bf16 %v1070_v41  ;;  %v1071_v44 = vunpack.i.l.bf16 %v1070_v41  ;;  %v1122_v41 = vunpack.i.h.bf16 %v1551_v58 }
 0x115   : > { %v512_v51 = vsel %vm502_vm6, %v1097_v30, %v1096_v38 }
 0x116   : > { %v647_v59 = vpack.c.bf16 %v512_v51, %v481_v26  ;;  %v603_v60 = vsel %vm595_vm1, %v1062_v32, %v1071_v44  ;;  %v602_v62 = vsel %vm595_vm1, %v1071_v44, %v1072_v42  ;;  %v1077_v32 = vunpack.i.h.bf16 %v1467_v20 }
 0x117   : > { %v668_v63 = vpack.c.bf16 %v603_v60, %v572_v55  ;;  %v669_v0 = vpack.c.bf16 %v602_v62, %v571_v61  ;;  %v1121_v44 = vunpack.i.l.bf16 %v1551_v58  ;;  %v1106_v55 = vunpack.i.l.bf16 %v1511_v57 }
 0x118   : > { %735 = vmatpush.bf16.msra.mxu0 %v647_v59 }
 0x119   : > { %746 = vmatpush.bf16.msra.mxu1 %v668_v63  ;;  %759 = vmatpush.bf16.msra.mxu2 %v669_v0  ;;  %v1107_v63 = vunpack.i.h.bf16 %v1511_v57 }
 0x11a   : > { %v1559_v1 = vpop.permute.xlu0 %1109  ;;  %v1574_v16 = vpop.permute.xlu2 %1134 }
 0x11b   : > { %v1561_v39 = vpop.permute.xlu1 %1084 }
 0x11c   : > { %v1087_v5 = vunpack.i.h.bf16 %v1561_v39  ;;  %v1086_v6 = vunpack.i.l.bf16 %v1561_v39 }
 0x11e   : > { %v541_v7 = vsel %vm533_vm4, %v1082_v46, %v1086_v6  ;;  %v540_v8 = vsel %vm533_vm4, %v1086_v6, %v1087_v5  ;;  %v631_v46 = vsel %vm626_vm0, %v1076_v56, %v1077_v32  ;;  %v419_v56 = vsel %vm409_vm7, %v1122_v41, %v1121_v44 }
 0x11f   : > { %v658_v33 = vpack.c.bf16 %v541_v7, %v1337_v34  ;;  %v659_v13 = vpack.c.bf16 %v540_v8, %v1341_v35  ;;  %v681_v61 = vpack.c.bf16 %v631_v46, %v631_v46  ;;  %v601_v7 = vsel %vm595_vm1, %v1072_v42, %v1106_v55 }
 0x120   : > { %v1112_v46 = vunpack.i.h.bf16 %v1559_v1  ;;  %v600_v42 = vsel %vm595_vm1, %v1106_v55, %v1107_v63 }
 0x121   : > { %747 = vmatpush.bf16.msra.mxu1 %v658_v33  ;;  %760 = vmatpush.bf16.msra.mxu2 %v659_v13  ;;  %v712_v33 = vsel %vm698_vm2, %v681_v61, 0 }
 0x122   : > { %v1582_v26 = vpop.permute.xlu0 %1124 }
 0x123   : > { %v1127_v34 = vunpack.i.h.bf16 %v1582_v26  ;;  %v1126_v35 = vunpack.i.l.bf16 %v1582_v26  ;;  %v1588_v51 = vpop.permute.xlu1 %1099 }
 0x124   : > { %v1102_v59 = vunpack.i.h.bf16 %v1588_v51  ;;  %v1101_v60 = vunpack.i.l.bf16 %v1588_v51 }
 0x125   : > { %v450_v62 = vsel %vm440_vm8, %v1127_v34, %v1126_v35 }
 0x126   : > { %v637_v0 = vpack.c.bf16 %v450_v62, %v419_v56  ;;  %v570_v6 = vsel %vm564_vm3, %v1067_v17, %v1101_v60  ;;  %v569_v13 = vsel %vm564_vm3, %v1101_v60, %v1102_v59  ;;  %v1111_v56 = vunpack.i.l.bf16 %v1559_v1  ;;  %v1617_v62 = vpop.permute.xlu2 %1149 }
 0x127   : > { %v670_v8 = vpack.c.bf16 %v601_v7, %v570_v6 }
 0x128   : > { %736 = vmatpush.bf16.msra.mxu0 %v637_v0  ;;  %v671_v0 = vpack.c.bf16 %v600_v42, %v569_v13  ;;  %v480_v60 = vsel %vm471_vm5, %v1091_v12, %v1111_v56  ;;  %v1640_v42 = vld [vmem:[%s1939_s4] sm:$0xf] }
 0x129   : > { %772 = vmatpush.bf16.msra.mxu3 %v670_v8  ;;  %v479_v8 = vsel %vm471_vm5, %v1111_v56, %v1112_v46 }
 0x12a   : > { %v1619_v17 = vpop.permute.xlu0 %1139 }
 0x12b   : > { %v1115_v61 = vpop.permute.xlu1 %1114  ;;  %1012 = vmatmul.msk.bf16.vlgmr.msra.gmra.mxu0 %vm694_vm9, %v1640_v42 }
 0x12c   : > { %784 = vmatpush.bf16.msrb.mxu0 %v712_v33  ;;  %v1117_v6 = vunpack.i.h.bf16 %v1115_v61  ;;  %v1116_v7 = vunpack.i.l.bf16 %v1115_v61 }
 0x12e   : > { %v511_v1 = vsel %vm502_vm6, %v1096_v38, %v1116_v7  ;;  %v510_v55 = vsel %vm502_vm6, %v1116_v7, %v1117_v6  ;;  %v1648_v56 = vpop.permute.xlu2 %1164 }
 0x12f   : > { %v648_v33 = vpack.c.bf16 %v511_v1, %v480_v60  ;;  %v649_v13 = vpack.c.bf16 %v510_v55, %v479_v8  ;;  %v1137_v1 = vunpack.i.h.bf16 %v1574_v16  ;;  %v1136_v8 = vunpack.i.l.bf16 %v1574_v16 }
 0x130   : > { %785 = vmatpush.bf16.msrb.mxu0 %v671_v0  ;;  %v1152_v55 = vunpack.i.h.bf16 %v1617_v62 }
 0x131   : > { %748 = vmatpush.bf16.msra.mxu1 %v648_v33  ;;  %761 = vmatpush.bf16.msra.mxu2 %v649_v13  ;;  %v1151_v33 = vunpack.i.l.bf16 %v1617_v62 }
 0x132   : > { %v1642_v12 = vpop.permute.xlu0 %1154 }
 0x133   : > { %v1646_v38 = vpop.permute.xlu1 %1129  ;;  %v1157_v61 = vunpack.i.h.bf16 %v1642_v12  ;;  %v1156_v0 = vunpack.i.l.bf16 %v1642_v12 }
 0x134   : > { %v1132_v7 = vunpack.i.h.bf16 %v1646_v38  ;;  %v1131_v60 = vunpack.i.l.bf16 %v1646_v38 }
 0x135   : > { %v509_v2 = vsel %vm502_vm6, %v1117_v6, %v1156_v0  ;;  %v508_v39 = vsel %vm502_vm6, %v1156_v0, %v1157_v61 }
 0x136   : > { %v539_v13 = vsel %vm533_vm4, %v1087_v5, %v1131_v60  ;;  %v538_v49 = vsel %vm533_vm4, %v1131_v60, %v1132_v7  ;;  %v630_v5 = vsel %vm626_vm0, %v1077_v32, %v1136_v8  ;;  %v1692_v47 = vpop.permute.xlu2 %1179 }
 0x137   : > { %v660_v3 = vpack.c.bf16 %v539_v13, %v1345_v36  ;;  %v661_v4 = vpack.c.bf16 %v538_v49, %v1373_v52  ;;  %v629_v36 = vsel %vm626_vm0, %v1136_v8, %v1137_v1  ;;  %v1142_v49 = vunpack.i.h.bf16 %v1619_v17 }
 0x138   : > { %v1141_v52 = vunpack.i.l.bf16 %v1619_v17  ;;  %v682_v8 = vpack.c.bf16 %v630_v5, %v630_v5  ;;  %v683_v48 = vpack.c.bf16 %v629_v36, %v629_v36  ;;  %v1182_v51 = vunpack.i.h.bf16 %v1692_v47 }
 0x139   : > { %773 = vmatpush.bf16.msra.mxu3 %v660_v3  ;;  %786 = vmatpush.bf16.msrb.mxu0 %v661_v4  ;;  %v478_v3 = vsel %vm471_vm5, %v1112_v46, %v1151_v33  ;;  %v477_v4 = vsel %vm471_vm5, %v1151_v33, %v1152_v55 }
 0x13a   : > { %v1684_v6 = vpop.permute.xlu0 %1169  ;;  %v650_v32 = vpack.c.bf16 %v509_v2, %v478_v3  ;;  %v651_v0 = vpack.c.bf16 %v508_v39, %v477_v4  ;;  %v418_v46 = vsel %vm409_vm7, %v1121_v44, %v1141_v52  ;;  %v417_v2 = vsel %vm409_vm7, %v1141_v52, %v1142_v49 }
 0x13b   : > { %v1145_v20 = vpop.permute.xlu1 %1144  ;;  %v1167_v3 = vunpack.i.h.bf16 %v1648_v56  ;;  %v1166_v4 = vunpack.i.l.bf16 %v1648_v56  ;;  %v715_v44 = vsel %vm698_vm2, %v682_v8, 0 }
 0x13c   : > { %v1147_v60 = vunpack.i.h.bf16 %v1145_v20  ;;  %v1146_v13 = vunpack.i.l.bf16 %v1145_v20 }
 0x13d   : > { %774 = vmatpush.bf16.msra.mxu3 %v650_v32  ;;  %787 = vmatpush.bf16.msrb.mxu0 %v651_v0  ;;  %v598_v8 = vsel %vm595_vm1, %v1166_v4, %v1167_v3 }
 0x13e   : > { %v449_v33 = vsel %vm440_vm8, %v1126_v35, %v1146_v13  ;;  %v448_v39 = vsel %vm440_vm8, %v1146_v13, %v1147_v60  ;;  %v718_v35 = vsel %vm698_vm2, %v683_v48, 0  ;;  %v599_v48 = vsel %vm595_vm1, %v1107_v63, %v1166_v4  ;;  %v1736_v63 = vpop.permute.xlu2 %1194 }
 0x13f   : > { %v638_v5 = vpack.c.bf16 %v449_v33, %v418_v46  ;;  %v639_v36 = vpack.c.bf16 %v448_v39, %v417_v2  ;;  %v1172_v33 = vunpack.i.h.bf16 %v1684_v6  ;;  %v1171_v2 = vunpack.i.l.bf16 %v1684_v6 }
 0x141   : > { %749 = vmatpush.bf16.msra.mxu1 %v638_v5  ;;  %762 = vmatpush.bf16.msra.mxu2 %v639_v36  ;;  %v627_v38 = vsel %vm626_vm0, %v1171_v2, %v1172_v33 }
 0x142   : > { %v1712_v20 = vpop.permute.xlu0 %1184 }
 0x143   : > { %v1160_v52 = vpop.permute.xlu1 %1159  ;;  %v1187_v32 = vunpack.i.h.bf16 %v1712_v20  ;;  %v1186_v0 = vunpack.i.l.bf16 %v1712_v20  ;;  %v628_v20 = vsel %vm626_vm0, %v1137_v1, %v1171_v2 }
 0x144   : > { %v1162_v13 = vunpack.i.h.bf16 %v1160_v52  ;;  %v1161_v46 = vunpack.i.l.bf16 %v1160_v52  ;;  %1013 = vmatmul.msk.bf16.vlgmr.msra.gmra.mxu1 %vm694_vm9, %v1640_v42  ;;  %1014 = vmatmul.msk.bf16.vlgmr.msra.gmra.mxu2 %vm694_vm9, %v1640_v42  ;;  %v684_v16 = vpack.c.bf16 %v628_v20, %v628_v20 }
 0x145   : > { %797 = vmatpush.bf16.msrb.mxu1 %v715_v44  ;;  %810 = vmatpush.bf16.msrb.mxu2 %v718_v35  ;;  %v537_v4 = vsel %vm533_vm4, %v1132_v7, %v1186_v0  ;;  %v536_v44 = vsel %vm533_vm4, %v1186_v0, %v1187_v32 }
 0x146   : > { %v568_v39 = vsel %vm564_vm3, %v1102_v59, %v1161_v46  ;;  %v567_v57 = vsel %vm564_vm3, %v1161_v46, %v1162_v13  ;;  %v1181_v59 = vunpack.i.l.bf16 %v1692_v47  ;;  %v662_v52 = vpack.c.bf16 %v537_v4, %v1377_v53 }
 0x147   : > { %v672_v5 = vpack.c.bf16 %v599_v48, %v568_v39  ;;  %v673_v36 = vpack.c.bf16 %v598_v8, %v567_v57  ;;  %v663_v0 = vpack.c.bf16 %v536_v44, %v1413_v9  ;;  %v685_v8 = vpack.c.bf16 %v627_v38, %v627_v38 }
 0x148   : > { %v447_v2 = vsel %vm440_vm8, %v1147_v60, %v1181_v59  ;;  %v446_v9 = vsel %vm440_vm8, %v1181_v59, %v1182_v51  ;;  %v721_v17 = vsel %vm698_vm2, %v684_v16, 0  ;;  %v1197_v60 = vunpack.i.h.bf16 %v1736_v63 }
 0x149   : > { %798 = vmatpush.bf16.msrb.mxu1 %v672_v5  ;;  %811 = vmatpush.bf16.msrb.mxu2 %v673_v36  ;;  %v1196_v5 = vunpack.i.l.bf16 %v1736_v63  ;;  %v530_v36 = vpop.permute.xlu2 %529 }
 0x14a   : > { %v1200_v35 = vpop.permute.xlu0 %1199 }
 0x14b   : > { %v1754_v7 = vpop.permute.xlu1 %1174 }
 0x14c   : > { %v1177_v46 = vunpack.i.h.bf16 %v1754_v7  ;;  %v1176_v48 = vunpack.i.l.bf16 %v1754_v7 }
 0x14d   : > { %799 = vmatpush.bf16.msrb.mxu1 %v662_v52  ;;  %812 = vmatpush.bf16.msrb.mxu2 %v663_v0  ;;  %v597_v52 = vsel %vm595_vm1, %v1167_v3, %v1196_v5 }
 0x14e   : > { %v416_v1 = vsel %vm409_vm7, %v1142_v49, %v1176_v48  ;;  %v415_v53 = vsel %vm409_vm7, %v1176_v48, %v1177_v46  ;;  %v724_v49 = vsel %vm698_vm2, %v685_v8, 0  ;;  %v596_v48 = vsel %vm595_vm1, %v1196_v5, %v1197_v60 }
 0x14f   : > { %v640_v39 = vpack.c.bf16 %v447_v2, %v416_v1  ;;  %v641_v57 = vpack.c.bf16 %v446_v9, %v415_v53  ;;  %v535_v1 = vsel %vm533_vm4, %v1187_v32, %v530_v36  ;;  %v1202_v2 = vunpack.i.h.bf16 %v1200_v35 }
 0x150   : > { %v664_v3 = vpack.c.bf16 %v535_v1, %v1417_v10 }
 0x151   : > { %775 = vmatpush.bf16.msra.mxu3 %v640_v39  ;;  %788 = vmatpush.bf16.msrb.mxu0 %v641_v57  ;;  %v466_v9 = vpop.permute.xlu2 %465 }
 0x152   : > { %v1778_v4 = vpop.permute.xlu0 %1209 }
 0x153   : > { %v1190_v44 = vpop.permute.xlu1 %1189  ;;  %v1211_v12 = vunpack.i.l.bf16 %v1778_v4 }
 0x154   : > { %v1192_v20 = vunpack.i.h.bf16 %v1190_v44  ;;  %v1191_v59 = vunpack.i.l.bf16 %v1190_v44  ;;  %1015 = vmatmul.msk.bf16.vlgmr.msra.gmra.mxu3 %vm694_vm9, %v1640_v42  ;;  %1016 = vmatmul.msk.bf16.vlgmr.msrb.gmra.mxu0 %vm694_vm9, %v1640_v42 }
 0x155   : > { %823 = vmatpush.bf16.msrb.mxu3 %v721_v17  ;;  %836 = vmatpush.bf16.msra.mxu0 %v724_v49  ;;  %v474_v17 = vsel %vm471_vm5, %v1202_v2, %v466_v9  ;;  %v414_v28 = vsel %vm409_vm7, %v1177_v46, %v1211_v12  ;;  %v605_v46 = vsel %vm595_vm1, %v1197_v60, %v1061_v37 }
 0x156   : > { %v566_v38 = vsel %vm564_vm3, %v1162_v13, %v1191_v59  ;;  %v565_v0 = vsel %vm564_vm3, %v1191_v59, %v1192_v20  ;;  %v1201_v13 = vunpack.i.l.bf16 %v1200_v35  ;;  %v574_v47 = vsel %vm564_vm3, %v1192_v20, %v1056_v40 }
 0x157   : > { %v674_v16 = vpack.c.bf16 %v597_v52, %v566_v38  ;;  %v675_v8 = vpack.c.bf16 %v596_v48, %v565_v0  ;;  %v636_v38 = vsel %vm626_vm0, %v1172_v33, %v1046_v31  ;;  %v688_v52 = vld [vmem:[%s1940_s5] sm:$0xff]  ;;  %v676_v18 = vpack.c.bf16 %v605_v46, %v574_v47 }
 0x158   : > { %v476_v32 = vsel %vm471_vm5, %v1152_v55, %v1201_v13  ;;  %v475_v10 = vsel %vm471_vm5, %v1201_v13, %v1202_v2  ;;  %v1212_v55 = vunpack.i.h.bf16 %v1778_v4  ;;  %691 = vperm.xlu2 %1218, %v688_v52   ;;  %v686_v1 = vpack.c.bf16 %v636_v38, %v636_v38 }
 0x159   : > { %824 = vmatpush.bf16.msrb.mxu3 %v674_v16  ;;  %837 = vmatpush.bf16.msra.mxu0 %v675_v8  ;;  %v435_v33 = vpop.permute.xlu2 %434  ;;  %v1949_v47 = vperm.slane %v1314_v14, 4 }
 0x15a   : > { %v497_v56 = vpop.permute.xlu0 %496  ;;  %v413_v6 = vsel %vm409_vm7, %v1211_v12, %v1212_v55  ;;  %v727_v7 = vsel %vm698_vm2, %v686_v1, 0 }
 0x15b   : > { %v1205_v53 = vpop.permute.xlu1 %1204 }
 0x15c   : > { %v1207_v39 = vunpack.i.h.bf16 %v1205_v53  ;;  %v1206_v57 = vunpack.i.l.bf16 %v1205_v53 }
 0x15d   : > { %825 = vmatpush.bf16.msrb.mxu3 %v664_v3 }
 0x15e   : > { %v507_v35 = vsel %vm502_vm6, %v1157_v61, %v1206_v57  ;;  %v506_v49 = vsel %vm502_vm6, %v1206_v57, %v1207_v39  ;;  %v505_v5 = vsel %vm502_vm6, %v1207_v39, %v497_v56 }
 0x15f   : > { %v652_v44 = vpack.c.bf16 %v507_v35, %v476_v32  ;;  %v653_v59 = vpack.c.bf16 %v506_v49, %v475_v10  ;;  %v654_v62 = vpack.c.bf16 %v505_v5, %v474_v17 }
 0x161   : > { %800 = vmatpush.bf16.msrb.mxu1 %v652_v44  ;;  %813 = vmatpush.bf16.msrb.mxu2 %v653_v59  ;;  %v499_v60 = vpop.permute.xlu2 %498 }
 0x162   : > { %826 = vmatpush.bf16.msrb.mxu3 %v654_v62  ;;  %v532_v61 = vpop.permute.xlu0 %531  ;;  %v503_v53 = vsel %vm502_vm6, %v499_v60, %v1097_v30  ;;  %v504_v45 = vsel %vm502_vm6, %v497_v56, %v499_v60 }
 0x163   : > { %v534_v0 = vsel %vm533_vm4, %v530_v36, %v532_v61  ;;  %v1215_v48 = vpop.permute.xlu1 %1214  ;;  %v543_v19 = vsel %vm533_vm4, %v532_v61, %v1081_v50 }
 0x164   : > { %v665_v4 = vpack.c.bf16 %v534_v0, %v1429_v15  ;;  %v1217_v16 = vunpack.i.h.bf16 %v1215_v48  ;;  %v1216_v8 = vunpack.i.l.bf16 %v1215_v48  ;;  %v666_v37 = vpack.c.bf16 %v543_v19, %v1381_v54 }
 0x166   : > { %838 = vmatpush.bf16.msra.mxu0 %v665_v4  ;;  %v445_v31 = vsel %vm440_vm8, %v1182_v51, %v1216_v8  ;;  %v444_v15 = vsel %vm440_vm8, %v1216_v8, %v1217_v16  ;;  %v443_v40 = vsel %vm440_vm8, %v1217_v16, %v435_v33 }
 0x167   : > { %v642_v36 = vpack.c.bf16 %v445_v31, %v414_v28  ;;  %v643_v2 = vpack.c.bf16 %v444_v15, %v413_v6 }
 0x169   : > { %801 = vmatpush.bf16.msrb.mxu1 %v642_v36  ;;  %814 = vmatpush.bf16.msrb.mxu2 %v643_v2 }
 0x16a   : > { %v404_v57 = vpop.permute.xlu0 %403 }
 0x16b   : > { %v402_v51 = vpop.permute.xlu1 %401  ;;  %v410_v30 = vsel %vm409_vm7, %v404_v57, %v1122_v41 }
 0x16c   : > { %v412_v13 = vsel %vm409_vm7, %v1212_v55, %v402_v51  ;;  %1017 = vmatmul.msk.bf16.vlgmr.msrb.gmra.mxu1 %vm694_vm9, %v1640_v42  ;;  %1018 = vmatmul.msk.bf16.vlgmr.msrb.gmra.mxu2 %vm694_vm9, %v1640_v42  ;;  %v411_v27 = vsel %vm409_vm7, %v402_v51, %v404_v57 }
 0x16d   : > { %849 = vmatpush.bf16.msra.mxu1 %v727_v7  ;;  %v644_v63 = vpack.c.bf16 %v443_v40, %v412_v13 }
 0x16f   : > { %827 = vmatpush.bf16.msrb.mxu3 %v644_v63 }
 0x171   : > { %850 = vmatpush.bf16.msra.mxu1 %v676_v18  ;;  %v1950_v18 = vperm.slane %v1314_v14, 5 }
 0x172   : > { %1019 = vmatmul.msk.bf16.vlgmr.msrb.gmra.mxu3 %vm694_vm9, %v1640_v42 }
 0x173   : > { %v468_v20 = vpop.permute.xlu1 %467 }
 0x174   : > { %v472_v50 = vsel %vm471_vm5, %v468_v20, %v1092_v11  ;;  %v473_v54 = vsel %vm471_vm5, %v466_v9, %v468_v20 }
 0x175   : > { %851 = vmatpush.bf16.msra.mxu1 %v666_v37  ;;  %v655_v3 = vpack.c.bf16 %v504_v45, %v473_v54  ;;  %v656_v39 = vpack.c.bf16 %v503_v53, %v472_v50  ;;  %v1952_v54 = vperm.slane %v1314_v14, 7 }
 0x177   : > { %839 = vmatpush.bf16.msra.mxu0 %v655_v3 }
 0x179   : > { %852 = vmatpush.bf16.msra.mxu1 %v656_v39 }
 0x17b   : > { %v437_v21 = vpop.permute.xlu1 %436 }
 0x17c   : > { %v441_v11 = vsel %vm440_vm8, %v437_v21, %v1127_v34  ;;  %v442_v56 = vsel %vm440_vm8, %v435_v33, %v437_v21 }
 0x17d   : > { %v645_v9 = vpack.c.bf16 %v442_v56, %v411_v27  ;;  %v646_v17 = vpack.c.bf16 %v441_v11, %v410_v30 }
 0x17f   : > { %840 = vmatpush.bf16.msra.mxu0 %v645_v9  ;;  %853 = vmatpush.bf16.msra.mxu1 %v646_v17 }
 0x182   : > { %1020 = vmatmul.msk.bf16.vlgmr.msra.gmra.mxu0 %vm694_vm9, %v1640_v42  ;;  %1021 = vmatmul.msk.bf16.vlgmr.msra.gmra.mxu1 %vm694_vm9, %v1640_v42 }
 0x1a8   : > { %v738_v58 = vpop.f32.mrf.mxu0 }
 0x1b0   : > { %v740_v41 = vpop.f32.mrf.mxu0 }
 0x1b2   : > { %v692_v32 = vpop.permute.xlu2 %691 }
 0x1b3   : > { %v739_v26 = vadd.f32 %v738_v58, %v692_v32 }
 0x1b5   : > { %v869_v38 = vmul.f32 %v739_v26, %v357_v22 }
 0x1b7   : > { %v890_v1 = vmul.f32 %v869_v38, %v869_v38 }
 0x1c1   : > { %v751_v35 = vpop.f32.mrf.mxu1 }
 0x1c2   : > { %v752_v10 = vadd.f32 %v751_v35, %v692_v32 }
 0x1c4   : > { %v859_v29 = vpack.c.bf16 %v752_v10, %v739_v26  ;;  %v870_v52 = vmul.f32 %v752_v10, %v358_v23  ;;  %v1953_v10 = vperm.slane %v1361_v43, 0 }
 0x1c6   : > { %864 = vst [vmem:[%s1900_s11] sm:$0xff] %v859_v29  ;;  %v891_v28 = vmul.f32 %v870_v52, %v870_v52  ;;  %v879_v6 = vadd.f32 %v870_v52, %v869_v38 }
 0x1c7   : > { %v764_v34 = vpop.f32.mrf.mxu2 }
 0x1c8   : > { %v765_v59 = vadd.f32 %v764_v34, %v692_v32  ;;  %v900_v33 = vadd.f32 %v891_v28, %v890_v1  ;;  %v1954_v34 = vperm.slane %v1361_v43, 1 }
 0x1c9   : > { %v753_v49 = vpop.f32.mrf.mxu1 }
 0x1ca   : > { %v871_v8 = vmul.f32 %v765_v59, %v359_v24 }
 0x1cc   : > { %v892_v15 = vmul.f32 %v871_v8, %v871_v8  ;;  %v880_v23 = vadd.f32 %v879_v6, %v871_v8 }
 0x1ce   : > { %v901_v2 = vadd.f32 %v900_v33, %v892_v15 }
 0x1cf   : > { %v766_v5 = vpop.f32.mrf.mxu2 }
 0x1d1   : > { %v790_v42 = vpop.f32.mrf.mxu0 }
 0x1d2   : > { %v791_v48 = vadd.f32 %v790_v42, %v692_v32 }
 0x1d4   : > { %v873_v51 = vmul.f32 %v791_v48, %v1949_v47 }
 0x1d6   : > { %v894_v20 = vmul.f32 %v873_v51, %v873_v51 }
 0x1d7   : > { %v777_v44 = vpop.f32.mrf.mxu3 }
 0x1d8   : > { %v778_v62 = vadd.f32 %v777_v44, %v692_v32 }
 0x1d9   : > { %v792_v55 = vpop.f32.mrf.mxu0 }
 0x1da   : > { %v860_v12 = vpack.c.bf16 %v778_v62, %v765_v59  ;;  %v872_v22 = vmul.f32 %v778_v62, %v360_v25  ;;  %v1951_v25 = vperm.slane %v1314_v14, 6 }
 0x1dc   : > { %865 = vst [vmem:[%s1900_s11 + $0x8] sm:$0xff] %v860_v12  ;;  %v893_v7 = vmul.f32 %v872_v22, %v872_v22  ;;  %v881_v63 = vadd.f32 %v880_v23, %v872_v22 }
 0x1de   : > { %v902_v60 = vadd.f32 %v901_v2, %v893_v7  ;;  %v882_v50 = vadd.f32 %v881_v63, %v873_v51 }
 0x1df   : > { %v779_v61 = vpop.f32.mrf.mxu3 }
 0x1e0   : > { %v903_v39 = vadd.f32 %v902_v60, %v894_v20 }
 0x1e9   : > { %v803_v0 = vpop.f32.mrf.mxu1 }
 0x1ea   : > { %v804_v4 = vadd.f32 %v803_v0, %v692_v32 }
 0x1ec   : > { %v861_v16 = vpack.c.bf16 %v804_v4, %v791_v48  ;;  %v874_v40 = vmul.f32 %v804_v4, %v1950_v18 }
 0x1ee   : > { %866 = vst [vmem:[%s1900_s11 + $0x10] sm:$0xff] %v861_v16  ;;  %v895_v45 = vmul.f32 %v874_v40, %v874_v40  ;;  %v883_v30 = vadd.f32 %v882_v50, %v874_v40 }
 0x1ef   : > { %v816_v31 = vpop.f32.mrf.mxu2 }
 0x1f0   : > { %v817_v46 = vadd.f32 %v816_v31, %v692_v32  ;;  %v904_v27 = vadd.f32 %v903_v39, %v895_v45 }
 0x1f1   : > { %v805_v36 = vpop.f32.mrf.mxu1 }
 0x1f2   : > { %v875_v53 = vmul.f32 %v817_v46, %v1951_v25 }
 0x1f4   : > { %v896_v57 = vmul.f32 %v875_v53, %v875_v53  ;;  %v884_v9 = vadd.f32 %v883_v30, %v875_v53 }
 0x1f5   : > { %v829_v24 = vpop.f32.mrf.mxu3 }
 0x1f6   : > { %v830_v13 = vadd.f32 %v829_v24, %v692_v32  ;;  %v905_v26 = vadd.f32 %v904_v27, %v896_v57 }
 0x1f7   : > { %v818_v19 = vpop.f32.mrf.mxu2 }
 0x1f8   : > { %v862_v37 = vpack.c.bf16 %v830_v13, %v817_v46  ;;  %v876_v3 = vmul.f32 %v830_v13, %v1952_v54 }
 0x1fa   : > { %867 = vst [vmem:[%s1900_s11 + $0x18] sm:$0xff] %v862_v37  ;;  %v897_v17 = vmul.f32 %v876_v3, %v876_v3  ;;  %v885_v35 = vadd.f32 %v884_v9, %v876_v3 }
 0x1fc   : > { %v906_v44 = vadd.f32 %v905_v26, %v897_v17 }
 0x1fd   : > { %v831_v21 = vpop.f32.mrf.mxu3 }
 0x1ff   : > { %v842_v11 = vpop.f32.mrf.mxu0  ;;  %v855_v56 = vpop.f32.mrf.mxu1 }
 0x200   : > { %v843_v58 = vadd.f32 %v842_v11, %v692_v32  ;;  %v856_v41 = vadd.f32 %v855_v56, %v692_v32 }
 0x202   : > { %v877_v29 = vmul.f32 %v843_v58, %v1953_v10  ;;  %v863_v14 = vpack.c.bf16 %v856_v41, %v843_v58  ;;  %v878_v49 = vmul.f32 %v856_v41, %v1954_v34 }
 0x204   : > { %v898_v5 = vmul.f32 %v877_v29, %v877_v29  ;;  %868 = vst [vmem:[%s1900_s11 + $0x20] sm:$0xff] %v863_v14  ;;  %v886_v42 = vadd.f32 %v885_v35, %v877_v29  ;;  %v899_v62 = vmul.f32 %v878_v49, %v878_v49 }
 0x206   : > { %v887_v59 = vadd.f32 %v886_v42, %v878_v49  ;;  %v907_v55 = vadd.f32 %v906_v44, %v898_v5 }
 0x207   : > { %v844_v12 = vpop.f32.mrf.mxu0  ;;  %v857_v32 = vpop.f32.mrf.mxu1 }
 0x208   : > { %888 = vadd.xlane.f32.xlu0 %v887_v59  ;;  %v908_v61 = vadd.f32 %v907_v55, %v899_v62 }
 0x20a   : > { %909 = vadd.xlane.f32.xlu1 %v908_v61 }
 0x27b   : > { %v889_v43 = vpop.xlane.xlu0 %888 }
 0x27c   : > { %912 = vst.msk [vmem:[%s294_s13] sm:$0xff] %vm911_vm10, %v889_v43 }
 0x27d   : > { %v910_v38 = vpop.xlane.xlu1 %909 }
 0x27e   : > { %913 = vst.msk [vmem:[%s294_s13 + $0x8] sm:$0xff] %vm911_vm10, %v910_v38 }
 0x27f PF: > { %s18_s24 = sadd.s32 1, %s1225_s24  }
 0x280   : > { %p15_p5 = scmp.ge.s32.totalorder %s18_s24, 4  }
 0x282   :  { %17 = sbr.rel (!%p15_p5) target bundleno = 1 (0x1), region = 86 }

// kernel: gen_block_forward.3
= control target key start
LH: loop header
LB: loop body
LE: loop exit
PB: predicated region body
PF: predicated region fallthrough
CT: control target
= control target key end

     0   :  { %s1210_s24 = smov 0   ;;  %s1846_s0 = inlined_call_operand.vmem [shape: bf16[8,2560], index: 0, kind: input, shape index: {}]   ;;  %s1847_s1 = inlined_call_operand.vmem [shape: bf16[8,2560], index: 1, kind: input, shape index: {}]   ;;  %s1848_s2 = inlined_call_operand.vmem [shape: f32[1,1280], index: 2, kind: input, shape index: {}]   ;;  %s1849_s3 = inlined_call_operand.vmem [shape: f32[8,1], index: 3, kind: input, shape index: {}]   ;;  %s1850_s4 = inlined_call_operand.vmem [shape: f32[8,1], index: 4, kind: input, shape index: {}]   ;;  %s1851_s5 = inlined_call_operand.vmem [shape: bf16[8,80], index: 5, kind: input, shape index: {}]   ;;  %s1852_s6 = inlined_call_operand.vmem [shape: f32[8,1], index: 6, kind: input, shape index: {}]   ;;  %s1853_s7 = inlined_call_operand.vmem [shape: f32[8,2560], index: 7, kind: output, shape index: {}]  }
   0x1 LB: > { %s930_s25 = sadd.s32 4294967295, %s1159_s24   ;;  %p934_p0 = scmp.ge.s32.totalorder %s1159_s24, 1  ;;  %s1159_s24 = sphi %s1210_s24, %s17_s24  }
   0x2   : > { %p249_p1 = scmp.lt.s32.totalorder %s1159_s24, 3 }
   0x4   : > { %p250_p2 = pnand %p934_p0, %p249_p1 }
   0x5   : > { %s286_s30 = smul.u32 (!%p250_p2), 10, %s930_s25  ;;  %s1162_s16 = smov (!%p250_p2), 93  }
   0x6   : > { %253 = sbr.rel (%p250_p2) target bundleno = 512 (0x200), region = 48  ;;  %s1163_s17 = smov (!%p250_p2), 35  }
   0x7   : > { %p287_p3 = scmp.lt.s32.totalorder (!%p250_p2), %s286_s30, 19  ;;  %s1164_s18 = smov (!%p250_p2), 95  }
   0x8   : > { %s1165_s19 = smov (!%p250_p2), 127   ;;  %s1166_s20 = smov (!%p250_p2), 33  }
   0x9   : > { %s1167_s21 = smov (!%p250_p2), 94   ;;  %s1168_s22 = smov (!%p250_p2), 1  }
   0xa   : > { %s1169_s23 = smov (!%p250_p2), 34  }
   0xb   : > { %v322_v0 = vld [vmem:[%s1849_s3] sm:$0xff]  ;;  %v1161_v1 = vmov 0   ;;  %s1859_s30 = smov (!%p287_p3, %s286_s30), 19  ;;  %v321_v31 = vld [vmem:[%s1848_s2 + $0x8] sm:$0x3]  ;;  %vm718_vm8 = vcmask 654336  }
   0xc   : > { %967 = vset.pattern.permute.xlu0 %v1161_v1  ;;  %v338_v2 = vld [vmem:[%s1850_s4] sm:$0xff]  ;;  %s935_s8 = sshll.u32 %s1859_s30, 2  ;;  %v374_v45 = vperm.slane %v321_v31, 0  ;;  %v375_v62 = vperm.slane %v321_v31, 1  ;;  %s937_s10 = sshll.u32 %s1859_s30, 3 }
   0xd   : > { %325 = vperm.xlu0 %967, %v322_v0   ;;  %s290_s11 = scalar_lea.vmem %s1846_s0, %s935_s8  ;;  %v1240_v15 = vld [vmem:[%s1848_s2] sm:$0xff]  ;;  %s1388_s29 = scalar_lea.vmem %s1847_s1, %s935_s8 }
   0xe   : > { %v309_v3 = vld [vmem:[%s290_s11 + $0x20] sm:$0xff]  ;;  %v307_v7 = vld [vmem:[%s290_s11 + $0x10] sm:$0xff]  ;;  %v306_v8 = vld [vmem:[%s290_s11 + $0x8] sm:$0xff]  ;;  %v366_v22 = vperm.slane %v1240_v15, 0  ;;  %v367_v23 = vperm.slane %v1240_v15, 1  ;;  %v370_v27 = vperm.slane %v1240_v15, 4  ;;  %s1831_s13 = scalar_lea.vmem %s1853_s7, %s937_s10 }
   0xf   : > { %v318_v4 = vunpack.c.l.bf16 %v309_v3  ;;  %v305_v6 = vld [vmem:[%s290_s11] sm:$0xff]  ;;  %v1234_v9 = vld [vmem:[%s290_s11 + $0x18] sm:$0xff]  ;;  %v314_v13 = vunpack.c.l.bf16 %v307_v7  ;;  %v315_v14 = vunpack.c.h.bf16 %v307_v7  ;;  %v312_v16 = vunpack.c.l.bf16 %v306_v8 }
  0x10   : > { %v310_v10 = vunpack.c.l.bf16 %v305_v6  ;;  %v311_v11 = vunpack.c.h.bf16 %v305_v6  ;;  %v313_v17 = vunpack.c.h.bf16 %v306_v8  ;;  %v316_v18 = vunpack.c.l.bf16 %v1234_v9 }
  0x11   : > { %v319_v19 = vunpack.c.h.bf16 %v309_v3  ;;  %v371_v28 = vperm.slane %v1240_v15, 5  ;;  %v368_v49 = vperm.slane %v1240_v15, 2  ;;  %v369_v50 = vperm.slane %v1240_v15, 3 }
  0x12   : > { %v372_v54 = vperm.slane %v1240_v15, 6  ;;  %v317_v8 = vunpack.c.h.bf16 %v1234_v9 }
  0x15   : > { %341 = vperm.xlu0 %967, %v338_v2  }
  0x7f   : > { %v1232_v5 = vpop.permute.xlu0 %325 }
  0x80   : > { %v336_v12 = vmul.f32 %v1232_v5, %v318_v4  ;;  %v328_v20 = vmul.f32 %v1232_v5, %v310_v10  ;;  %v329_v21 = vmul.f32 %v1232_v5, %v311_v11  ;;  %v332_v24 = vmul.f32 %v1232_v5, %v314_v13 }
  0x81   : > { %v333_v25 = vmul.f32 %v1232_v5, %v315_v14  ;;  %v330_v29 = vmul.f32 %v1232_v5, %v312_v16  ;;  %v331_v30 = vmul.f32 %v1232_v5, %v313_v17  ;;  %v334_v34 = vmul.f32 %v1232_v5, %v316_v18 }
  0x82   : > { %v337_v35 = vmul.f32 %v1232_v5, %v319_v19  ;;  %v335_v10 = vmul.f32 %v1232_v5, %v317_v8  ;;  %v373_v13 = vperm.slane %v1240_v15, 7  ;;  %v416_v18 = vlaneseq }
  0x87   : > { %v1249_v26 = vpop.permute.xlu0 %341 }
  0x88   : > { %v344_v32 = vadd.f32 %v1249_v26, %v328_v20  ;;  %v345_v33 = vadd.f32 %v1249_v26, %v329_v21  ;;  %v348_v36 = vadd.f32 %v1249_v26, %v332_v24  ;;  %v349_v37 = vadd.f32 %v1249_v26, %v333_v25  ;;  %v712_v24 = vld [vmem:[%s1852_s6] sm:$0xff] }
  0x89   : > { %v346_v38 = vadd.f32 %v1249_v26, %v330_v29  ;;  %v352_v39 = vadd.f32 %v1249_v26, %v336_v12  ;;  %v347_v42 = vadd.f32 %v1249_v26, %v331_v30  ;;  %v350_v46 = vadd.f32 %v1249_v26, %v334_v34 }
  0x8a   : > { %v354_v40 = vmax.f32 %v344_v32, 0.0  ;;  %v355_v41 = vmax.f32 %v345_v33, 0.0  ;;  %v358_v43 = vmax.f32 %v348_v36, 0.0  ;;  %v359_v44 = vmax.f32 %v349_v37, 0.0 }
  0x8b   : > { %v353_v47 = vadd.f32 %v1249_v26, %v337_v35  ;;  %v362_v48 = vmax.f32 %v352_v39, 0.0  ;;  %v356_v53 = vmax.f32 %v346_v38, 0.0  ;;  %v357_v57 = vmax.f32 %v347_v42, 0.0 }
  0x8c   : > { %v1271_v51 = vmul.f32 %v366_v22, %v354_v40  ;;  %v1273_v52 = vmul.f32 %v367_v23, %v355_v41  ;;  %v1276_v55 = vmul.f32 %v370_v27, %v358_v43  ;;  %v1278_v56 = vmul.f32 %v371_v28, %v359_v44  ;;  %v646_v27 = vld [vmem:[%s1388_s29] sm:$0xff]  ;;  %v647_v41 = vld [vmem:[%s1388_s29 + $0x8] sm:$0xff] }
  0x8d   : > { %v1280_v58 = vmul.f32 %v374_v45, %v362_v48  ;;  %v360_v60 = vmax.f32 %v350_v46, 0.0  ;;  %v363_v61 = vmax.f32 %v353_v47, 0.0  ;;  %v1289_v0 = vmul.f32 %v368_v49, %v356_v53 }
  0x8e   : > { %v988_v59 = vpack.i.bf16 %v1273_v52, %v1271_v51  ;;  %v978_v63 = vpack.i.bf16 %v1278_v56, %v1276_v55  ;;  %v1291_v1 = vmul.f32 %v369_v50, %v357_v57  ;;  %v351_v11 = vadd.f32 %v1249_v26, %v335_v10 }
  0x8f   : > { %v1293_v2 = vmul.f32 %v372_v54, %v360_v60  ;;  %v1295_v3 = vmul.f32 %v375_v62, %v363_v61  ;;  %v1359_v20 = vand.u32 127, %v416_v18  ;;  %v651_v30 = vunpack.c.l.bf16 %v646_v27 }
  0x90   : > { %989 = vrot.lane.b32.xlu0 %v988_v59, %s1162_s16  ;;  %969 = vrot.lane.b32.xlu1 %v988_v59, %s1163_s17  ;;  %v1003_v4 = vpack.i.bf16 %v1291_v1, %v1289_v0  ;;  %v361_v12 = vmax.f32 %v351_v11, 0.0  ;;  %v1093_v14 = vpack.i.bf16 %v1276_v55, %v1291_v1  ;;  %v652_v46 = vunpack.c.h.bf16 %v646_v27 }
  0x91   : > { %979 = vrot.lane.b32.xlu2 %v978_v63, %s1163_s17  ;;  %v983_v6 = vpack.i.bf16 %v1295_v3, %v1293_v2  ;;  %v1048_v7 = vpack.i.bf16 %v1289_v0, %v1295_v3  ;;  %v1123_v15 = vpack.i.bf16 %v1293_v2, %v1278_v56  ;;  %v1113_v16 = vpack.i.bf16 %v1295_v3, %v1280_v58 }
  0x92   : > { %v1325_v9 = vmul.f32 %v373_v13, %v361_v12  ;;  %vm418_vm0 = vcmp.lt.s32.totalorder %v1359_v20, 35  ;;  %vm635_vm1 = vcmp.lt.s32.totalorder %v1359_v20, 93  ;;  %v653_v47 = vunpack.c.l.bf16 %v647_v41 }
  0x93   : > { %v654_v48 = vunpack.c.h.bf16 %v647_v41  ;;  %vm573_vm2 = vcmp.lt.s32.totalorder %v1359_v20, 95  ;;  %vm604_vm3 = vcmp.lt.s32.totalorder %v1359_v20, 94  ;;  %vm542_vm4 = vcmp.lt.s32.totalorder %v1359_v20, 127 }
  0x94   : > { %v1073_v5 = vpack.i.bf16 %v1325_v9, %v1293_v2  ;;  %v1148_v19 = vpack.i.bf16 %v1280_v58, %v1325_v9  ;;  %vm480_vm5 = vcmp.lt.s32.totalorder %v1359_v20, 33  ;;  %vm511_vm6 = vcmp.lt.s32.totalorder %v1359_v20, 1 }
  0x95   : > { %vm449_vm7 = vcmp.lt.s32.totalorder %v1359_v20, 34 }
  0x98   : > { %1004 = vrot.lane.b32.xlu0 %v1003_v4, %s1164_s18  ;;  %974 = vrot.lane.b32.xlu1 %v1003_v4, %s1163_s17 }
  0x99   : > { %984 = vrot.lane.b32.xlu2 %v983_v6, %s1163_s17 }
  0xa0   : > { %1019 = vrot.lane.b32.xlu0 %v988_v59, %s1165_s19  ;;  %994 = vrot.lane.b32.xlu1 %v1003_v4, %s1162_s16 }
  0xa1   : > { %999 = vrot.lane.b32.xlu2 %v988_v59, %s1164_s18 }
  0xa8   : > { %1034 = vrot.lane.b32.xlu0 %v988_v59, %s1166_s20  ;;  %1009 = vrot.lane.b32.xlu1 %v988_v59, %s1167_s21 }
  0xa9   : > { %1014 = vrot.lane.b32.xlu2 %v1003_v4, %s1167_s21 }
  0xb0   : > { %1049 = vrot.lane.b32.xlu0 %v1048_v7, %s1168_s22  ;;  %1024 = vrot.lane.b32.xlu1 %v1003_v4, %s1165_s19 }
  0xb1   : > { %1029 = vrot.lane.b32.xlu2 %v978_v63, %s1162_s16 }
  0xb8   : > { %1064 = vrot.lane.b32.xlu0 %v988_v59, %s1169_s23  ;;  %1039 = vrot.lane.b32.xlu1 %v1048_v7, %s1166_s20 }
  0xb9   : > { %1044 = vrot.lane.b32.xlu2 %v988_v59, %s1168_s22 }
  0xc0   : > { %1079 = vrot.lane.b32.xlu0 %v978_v63, %s1165_s19  ;;  %1054 = vrot.lane.b32.xlu1 %v978_v63, %s1164_s18 }
  0xc1   : > { %1059 = vrot.lane.b32.xlu2 %v978_v63, %s1167_s21 }
  0xc8   : > { %1094 = vrot.lane.b32.xlu0 %v1093_v14, %s1166_s20  ;;  %1069 = vrot.lane.b32.xlu1 %v1048_v7, %s1169_s23 }
  0xc9   : > { %1074 = vrot.lane.b32.xlu2 %v1073_v5, %s1162_s16 }
  0xd0   : > { %1109 = vrot.lane.b32.xlu0 %v1093_v14, %s1169_s23  ;;  %1084 = vrot.lane.b32.xlu1 %v1073_v5, %s1164_s18 }
  0xd1   : > { %1089 = vrot.lane.b32.xlu2 %v1073_v5, %s1167_s21 }
  0xd8   : > { %1124 = vrot.lane.b32.xlu0 %v1123_v15, %s1168_s22  ;;  %1099 = vrot.lane.b32.xlu1 %v1093_v14, %s1168_s22 }
  0xd9   : > { %1104 = vrot.lane.b32.xlu2 %v1073_v5, %s1165_s19 }
  0xe0   : > { %1139 = vrot.lane.b32.xlu0 %v1123_v15, %s1169_s23  ;;  %1114 = vrot.lane.b32.xlu1 %v1113_v16, %s1162_s16 }
  0xe1   : > { %1119 = vrot.lane.b32.xlu2 %v1123_v15, %s1166_s20 }
  0xe8   : > { %505 = vrot.lane.b32.xlu0 %v1325_v9, %s1168_s22  ;;  %1129 = vrot.lane.b32.xlu1 %v1113_v16, %s1164_s18 }
  0xe9   : > { %1134 = vrot.lane.b32.xlu2 %v1113_v16, %s1167_s21 }
  0xeb   : > { %v1351_v17 = vpop.permute.xlu2 %979 }
  0xec   : > { %v982_v22 = vunpack.i.h.bf16 %v1351_v17  ;;  %v981_v40 = vunpack.i.l.bf16 %v1351_v17 }
  0xf0   : > { %507 = vrot.lane.b32.xlu0 %v1280_v58, %s1168_s22  ;;  %1144 = vrot.lane.b32.xlu1 %v1113_v16, %s1165_s19 }
  0xf1   : > { %1149 = vrot.lane.b32.xlu2 %v1148_v19, %s1166_s20 }
  0xf3   : > { %v1361_v21 = vpop.permute.xlu2 %984 }
  0xf4   : > { %v1854_v23 = vunpack.i.l.bf16 %v1361_v21 }
  0xf6   : > { %v1375_v25 = vsel %vm418_vm0, %v982_v22, %v1854_v23 }
  0xf8   : > { %715 = vperm.xlu0 %967, %v712_v24   ;;  %410 = vrot.lane.b32.xlu1 %v1325_v9, %s1163_s17 }
  0xf9   : > { %443 = vrot.lane.b32.xlu2 %v1325_v9, %s1169_s23 }
  0xfb   : > { %v1381_v26 = vpop.permute.xlu2 %999 }
  0xfc   : > { %v1002_v10 = vunpack.i.h.bf16 %v1381_v26  ;;  %v1001_v11 = vunpack.i.l.bf16 %v1381_v26 }
  0xfe   : > { %v582_v27 = vsel %vm573_vm2, %v1001_v11, %v1002_v10 }
 0x100   : > { %412 = vrot.lane.b32.xlu1 %v1280_v58, %s1163_s17 }
 0x101   : > { %445 = vrot.lane.b32.xlu2 %v1280_v58, %s1169_s23 }
 0x102   : > { %v1395_v28 = vpop.permute.xlu0 %989  ;;  %v1397_v29 = vpop.permute.xlu1 %969 }
 0x103   : > { %v1400_v31 = vpop.permute.xlu2 %1014  ;;  %v992_v32 = vunpack.i.h.bf16 %v1395_v28  ;;  %v991_v33 = vunpack.i.l.bf16 %v1395_v28 }
 0x104   : > { %v1017_v59 = vunpack.i.h.bf16 %v1400_v31  ;;  %v1016_v60 = vunpack.i.l.bf16 %v1400_v31 }
 0x105   : > { %v644_v34 = vsel %vm635_vm1, %v991_v33, %v992_v32 }
 0x106   : > { %v701_v35 = vpack.c.bf16 %v651_v30, %v644_v34  ;;  %v611_v12 = vsel %vm604_vm3, %v1016_v60, %v1017_v59 }
 0x108   : > { %725 = vmatpush.bf16.msra.mxu0 %v701_v35 }
 0x10a   : > { %v1408_v36 = vpop.permute.xlu0 %1004  ;;  %v1410_v37 = vpop.permute.xlu1 %974 }
 0x10b   : > { %v1412_v38 = vpop.permute.xlu2 %1029  ;;  %v977_v39 = vunpack.i.h.bf16 %v1410_v37  ;;  %v1007_v43 = vunpack.i.h.bf16 %v1408_v36  ;;  %v1006_v50 = vunpack.i.l.bf16 %v1408_v36  ;;  %v1855_v36 = vunpack.i.h.bf16 %v1361_v21 }
 0x10c   : > { %v1031_v49 = vunpack.i.l.bf16 %v1412_v38 }
 0x10d   : > { %v1423_v42 = vsel %vm418_vm0, %v977_v39, %v981_v40  ;;  %v580_v8 = vsel %vm573_vm2, %v1006_v50, %v1007_v43 }
 0x10e   : > { %v693_v5 = vpack.c.bf16 %v611_v12, %v580_v8 }
 0x112   : > { %v1426_v44 = vpop.permute.xlu0 %1019  ;;  %v995_v45 = vpop.permute.xlu1 %994 }
 0x113   : > { %v1430_v53 = vpop.permute.xlu2 %1044  ;;  %v997_v54 = vunpack.i.h.bf16 %v995_v45  ;;  %v996_v57 = vunpack.i.l.bf16 %v995_v45  ;;  %v1022_v15 = vunpack.i.h.bf16 %v1426_v44  ;;  %v1021_v16 = vunpack.i.l.bf16 %v1426_v44 }
 0x115   : > { %v643_v61 = vsel %vm635_vm1, %v992_v32, %v996_v57  ;;  %v642_v62 = vsel %vm635_vm1, %v996_v57, %v997_v54  ;;  %v641_v63 = vsel %vm635_vm1, %v997_v54, %v1031_v49  ;;  %v581_v32 = vsel %vm573_vm2, %v1002_v10, %v1006_v50 }
 0x116   : > { %v702_v4 = vpack.c.bf16 %v652_v46, %v643_v61  ;;  %v703_v6 = vpack.c.bf16 %v653_v47, %v642_v62  ;;  %v704_v7 = vpack.c.bf16 %v654_v48, %v641_v63  ;;  %v551_v45 = vsel %vm542_vm4, %v1021_v16, %v1022_v15 }
 0x117   : > { %v681_v48 = vpack.c.bf16 %v551_v45, %v1271_v51  ;;  %v1047_v61 = vunpack.i.h.bf16 %v1430_v53  ;;  %v1046_v62 = vunpack.i.l.bf16 %v1430_v53  ;;  %v972_v53 = vunpack.i.h.bf16 %v1397_v29 }
 0x118   : > { %738 = vmatpush.bf16.msra.mxu1 %v702_v4  ;;  %751 = vmatpush.bf16.msra.mxu2 %v703_v6  ;;  %v971_v10 = vunpack.i.l.bf16 %v1397_v29 }
 0x119   : > { %764 = vmatpush.bf16.msra.mxu3 %v704_v7 }
 0x11a   : > { %v1454_v13 = vpop.permute.xlu0 %1034  ;;  %v1456_v14 = vpop.permute.xlu1 %1009 }
 0x11b   : > { %v1460_v18 = vpop.permute.xlu2 %1059  ;;  %v1012_v19 = vunpack.i.h.bf16 %v1456_v14  ;;  %v1011_v24 = vunpack.i.l.bf16 %v1456_v14  ;;  %v1037_v50 = vunpack.i.h.bf16 %v1454_v13  ;;  %v1036_v54 = vunpack.i.l.bf16 %v1454_v13 }
 0x11c   : > { %752 = vmatpush.bf16.msra.mxu2 %v693_v5 }
 0x11d   : > { %v613_v30 = vsel %vm604_vm3, %v1011_v24, %v1012_v19  ;;  %v612_v34 = vsel %vm604_vm3, %v1012_v19, %v1016_v60  ;;  %v489_v8 = vsel %vm480_vm5, %v1036_v54, %v1037_v50 }
 0x11e   : > { %v691_v35 = vpack.c.bf16 %v613_v30, %v582_v27  ;;  %v692_v41 = vpack.c.bf16 %v612_v34, %v581_v32 }
 0x120   : > { %726 = vmatpush.bf16.msra.mxu0 %v691_v35  ;;  %739 = vmatpush.bf16.msra.mxu1 %v692_v41 }
 0x122   : > { %v1481_v46 = vpop.permute.xlu0 %1049  ;;  %v1483_v47 = vpop.permute.xlu1 %1024 }
 0x123   : > { %v1027_v57 = vunpack.i.h.bf16 %v1483_v47  ;;  %v1026_v60 = vunpack.i.l.bf16 %v1483_v47  ;;  %v1493_v63 = vpop.permute.xlu2 %1074  ;;  %v1051_v13 = vunpack.i.l.bf16 %v1481_v46  ;;  %v1052_v5 = vunpack.i.h.bf16 %v1481_v46 }
 0x124   : > { %727 = vmatpush.bf16.msra.mxu0 %v681_v48  ;;  %v1076_v12 = vunpack.i.l.bf16 %v1493_v63  ;;  %v427_v48 = vsel %vm418_vm0, %v971_v10, %v972_v53 }
 0x125   : > { %v550_v51 = vsel %vm542_vm4, %v1022_v15, %v1026_v60  ;;  %v549_v4 = vsel %vm542_vm4, %v1026_v60, %v1027_v57  ;;  %v1032_v15 = vunpack.i.h.bf16 %v1412_v38  ;;  %v521_v47 = vsel %vm511_vm6, %v1051_v13, %v1046_v62 }
 0x126   : > { %v682_v6 = vpack.c.bf16 %v550_v51, %v1273_v52  ;;  %v683_v7 = vpack.c.bf16 %v549_v4, %v1289_v0  ;;  %v520_v52 = vsel %vm511_vm6, %v1046_v62, %v1047_v61  ;;  %v1512_v0 = vld [vmem:[%s1388_s29 + $0x10] sm:$0xff] }
 0x127   : > { %v672_v30 = vpack.c.bf16 %v520_v52, %v489_v8  ;;  %v656_v32 = vunpack.c.h.bf16 %v1512_v0  ;;  %v639_v60 = vsel %vm635_vm1, %v1032_v15, %v1076_v12  ;;  %v640_v23 = vsel %vm635_vm1, %v1031_v49, %v1032_v15 }
 0x128   : > { %740 = vmatpush.bf16.msra.mxu1 %v682_v6  ;;  %753 = vmatpush.bf16.msra.mxu2 %v683_v7  ;;  %v519_v6 = vsel %vm511_vm6, %v1047_v61, %v1052_v5  ;;  %v1062_v15 = vunpack.i.h.bf16 %v1460_v18 }
 0x12a   : > { %v1065_v19 = vpop.permute.xlu0 %1064  ;;  %v1515_v27 = vpop.permute.xlu1 %1039 }
 0x12b   : > { %v1067_v34 = vunpack.i.h.bf16 %v1065_v19  ;;  %v1066_v35 = vunpack.i.l.bf16 %v1065_v19  ;;  %v1042_v41 = vunpack.i.h.bf16 %v1515_v27  ;;  %v1041_v45 = vunpack.i.l.bf16 %v1515_v27 }
 0x12c   : > { %741 = vmatpush.bf16.msra.mxu1 %v672_v30  ;;  %v706_v19 = vpack.c.bf16 %v656_v32, %v639_v60  ;;  %v1555_v30 = vpop.permute.xlu2 %1089 }
 0x12d   : > { %v490_v51 = vsel %vm480_vm5, %v1041_v45, %v1036_v54  ;;  %v458_v62 = vsel %vm449_vm7, %v1066_v35, %v1067_v34  ;;  %v488_v4 = vsel %vm480_vm5, %v1037_v50, %v1042_v41  ;;  %v1552_v54 = vld [vmem:[%s1851_s5] sm:$0xf]  ;;  %v1061_v50 = vunpack.i.l.bf16 %v1460_v18 }
 0x12e   : > { %v671_v7 = vpack.c.bf16 %v521_v47, %v490_v51  ;;  %v662_v8 = vpack.c.bf16 %v458_v62, %v427_v48  ;;  %v673_v52 = vpack.c.bf16 %v519_v6, %v488_v4  ;;  %v1077_v6 = vunpack.i.h.bf16 %v1493_v63 }
 0x12f   : > { %v610_v51 = vsel %vm604_vm3, %v1017_v59, %v1061_v50 }
 0x130   : > { %728 = vmatpush.bf16.msra.mxu0 %v671_v7  ;;  %742 = vmatpush.bf16.msra.mxu1 %v662_v8  ;;  %v1574_v7 = vld [vmem:[%s1388_s29 + $0x18] sm:$0xff]  ;;  %v976_v8 = vunpack.i.l.bf16 %v1410_v37  ;;  %v423_v37 = vsel %vm418_vm0, %v981_v40, %v982_v22 }
 0x131   : > { %754 = vmatpush.bf16.msra.mxu2 %v673_v52 }
 0x132   : > { %v1557_v61 = vpop.permute.xlu0 %1079  ;;  %v1055_v47 = vpop.permute.xlu1 %1054  ;;  %v426_v49 = vsel %vm418_vm0, %v972_v53, %v976_v8  ;;  %v1092_v53 = vunpack.i.h.bf16 %v1555_v30 }
 0x133   : > { %v1081_v32 = vunpack.i.l.bf16 %v1557_v61  ;;  %v1056_v48 = vunpack.i.l.bf16 %v1055_v47  ;;  %939 = vmatmul.msk.bf16.vlgmr.msra.gmra.mxu1 %vm718_vm8, %v1552_v54 }
 0x134   : > { %790 = vmatpush.bf16.msrb.mxu1 %v706_v19  ;;  %v1583_v59 = vpop.permute.xlu2 %1104 }
 0x135   : > { %v579_v60 = vsel %vm573_vm2, %v1007_v43, %v1056_v48  ;;  %v548_v4 = vsel %vm542_vm4, %v1027_v57, %v1081_v32 }
 0x136   : > { %v694_v62 = vpack.c.bf16 %v610_v51, %v579_v60  ;;  %v684_v31 = vpack.c.bf16 %v548_v4, %v1291_v1  ;;  %v655_v60 = vunpack.c.l.bf16 %v1512_v0  ;;  %v657_v51 = vunpack.c.l.bf16 %v1574_v7 }
 0x137   : > { %v638_v1 = vsel %vm635_vm1, %v1076_v12, %v1077_v6  ;;  %v428_v0 = vsel %vm418_vm0, %v1855_v36, %v971_v10  ;;  %v1091_v36 = vunpack.i.l.bf16 %v1555_v30 }
 0x138   : > { %765 = vmatpush.bf16.msra.mxu3 %v694_v62  ;;  %v1057_v62 = vunpack.i.h.bf16 %v1055_v47  ;;  %v705_v4 = vpack.c.bf16 %v655_v60, %v640_v23  ;;  %v609_v23 = vsel %vm604_vm3, %v1061_v50, %v1062_v15 }
 0x13a   : > { %v1578_v52 = vpop.permute.xlu0 %1094  ;;  %v1580_v43 = vpop.permute.xlu1 %1069  ;;  %v578_v29 = vsel %vm573_vm2, %v1056_v48, %v1057_v62 }
 0x13b   : > { %v1072_v19 = vunpack.i.h.bf16 %v1580_v43  ;;  %v1071_v57 = vunpack.i.l.bf16 %v1580_v43 }
 0x13c   : > { %766 = vmatpush.bf16.msra.mxu3 %v684_v31  ;;  %v707_v31 = vpack.c.bf16 %v657_v51, %v638_v1  ;;  %v695_v51 = vpack.c.bf16 %v609_v23, %v578_v29 }
 0x13d   : > { %v459_v38 = vsel %vm449_vm7, %v1071_v57, %v1066_v35  ;;  %v457_v12 = vsel %vm449_vm7, %v1067_v34, %v1072_v19  ;;  %v1082_v35 = vunpack.i.h.bf16 %v1557_v61  ;;  %v1106_v34 = vunpack.i.l.bf16 %v1583_v59 }
 0x13e   : > { %v661_v10 = vpack.c.bf16 %v459_v38, %v428_v0  ;;  %v663_v47 = vpack.c.bf16 %v457_v12, %v426_v49  ;;  %v1107_v61 = vunpack.i.h.bf16 %v1583_v59  ;;  %v1641_v38 = vpop.permute.xlu2 %1119  ;;  %v608_v49 = vsel %vm604_vm3, %v1062_v15, %v1091_v36 }
 0x13f   : > { %v547_v1 = vsel %vm542_vm4, %v1081_v32, %v1082_v35  ;;  %v1096_v32 = vunpack.i.l.bf16 %v1578_v52  ;;  %v1122_v29 = vunpack.i.h.bf16 %v1641_v38  ;;  %v1121_v23 = vunpack.i.l.bf16 %v1641_v38 }
 0x140   : > { %729 = vmatpush.bf16.msra.mxu0 %v661_v10  ;;  %755 = vmatpush.bf16.msra.mxu2 %v663_v47  ;;  %v607_v10 = vsel %vm604_vm3, %v1091_v36, %v1092_v53  ;;  %v545_v15 = vsel %vm542_vm4, %v1106_v34, %v1107_v61  ;;  %v1097_v36 = vunpack.i.h.bf16 %v1578_v52 }
 0x142   : > { %v1626_v18 = vpop.permute.xlu0 %1109  ;;  %v1628_v0 = vpop.permute.xlu1 %1084 }
 0x143   : > { %v1087_v60 = vunpack.i.h.bf16 %v1628_v0  ;;  %v1086_v48 = vunpack.i.l.bf16 %v1628_v0  ;;  %938 = vmatmul.msk.bf16.vlgmr.msra.gmra.mxu0 %vm718_vm8, %v1552_v54  ;;  %940 = vmatmul.msk.bf16.vlgmr.msra.gmra.mxu2 %vm718_vm8, %v1552_v54 }
 0x144   : > { %777 = vmatpush.bf16.msrb.mxu0 %v705_v4  ;;  %803 = vmatpush.bf16.msrb.mxu2 %v707_v31  ;;  %v685_v31 = vpack.c.bf16 %v547_v1, %v1276_v55  ;;  %v1111_v55 = vunpack.i.l.bf16 %v1626_v18 }
 0x145   : > { %v577_v50 = vsel %vm573_vm2, %v1057_v62, %v1086_v48  ;;  %v576_v12 = vsel %vm573_vm2, %v1086_v48, %v1087_v60  ;;  %v546_v62 = vsel %vm542_vm4, %v1082_v35, %v1106_v34  ;;  %v1112_v35 = vunpack.i.h.bf16 %v1626_v18 }
 0x146   : > { %v696_v47 = vpack.c.bf16 %v608_v49, %v577_v50  ;;  %v697_v4 = vpack.c.bf16 %v607_v10, %v576_v12  ;;  %v686_v48 = vpack.c.bf16 %v546_v62, %v1278_v56  ;;  %v687_v34 = vpack.c.bf16 %v545_v15, %v1293_v2 }
 0x147   : > { %v487_v50 = vsel %vm480_vm5, %v1042_v41, %v1096_v32  ;;  %v486_v18 = vsel %vm480_vm5, %v1096_v32, %v1097_v36  ;;  %v485_v2 = vsel %vm480_vm5, %v1097_v36, %v1121_v23  ;;  %v484_v41 = vsel %vm480_vm5, %v1121_v23, %v1122_v29  ;;  %v650_v36 = vld [vmem:[%s1388_s29 + $0x20] sm:$0xff] }
 0x148   : > { %778 = vmatpush.bf16.msrb.mxu0 %v695_v51  ;;  %791 = vmatpush.bf16.msrb.mxu1 %v696_v47 }
 0x149   : > { %804 = vmatpush.bf16.msrb.mxu2 %v697_v4 }
 0x14a   : > { %v1669_v51 = vpop.permute.xlu0 %1124  ;;  %v1100_v1 = vpop.permute.xlu1 %1099 }
 0x14b   : > { %v1127_v52 = vunpack.i.h.bf16 %v1669_v51  ;;  %v1126_v49 = vunpack.i.l.bf16 %v1669_v51  ;;  %v1102_v56 = vunpack.i.h.bf16 %v1100_v1  ;;  %v1101_v12 = vunpack.i.l.bf16 %v1100_v1  ;;  %v1135_v1 = vpop.permute.xlu2 %1134 }
 0x14c   : > { %779 = vmatpush.bf16.msrb.mxu0 %v685_v31  ;;  %792 = vmatpush.bf16.msrb.mxu1 %v686_v48  ;;  %v455_v48 = vsel %vm449_vm7, %v1111_v55, %v1112_v35 }
 0x14d   : > { %805 = vmatpush.bf16.msrb.mxu2 %v687_v34  ;;  %v518_v10 = vsel %vm511_vm6, %v1052_v5, %v1101_v12  ;;  %v517_v47 = vsel %vm511_vm6, %v1101_v12, %v1102_v56  ;;  %v516_v4 = vsel %vm511_vm6, %v1102_v56, %v1126_v49  ;;  %v515_v32 = vsel %vm511_vm6, %v1126_v49, %v1127_v52 }
 0x14e   : > { %v674_v62 = vpack.c.bf16 %v518_v10, %v487_v50  ;;  %v675_v31 = vpack.c.bf16 %v517_v47, %v486_v18  ;;  %v676_v15 = vpack.c.bf16 %v516_v4, %v485_v2  ;;  %v677_v23 = vpack.c.bf16 %v515_v32, %v484_v41 }
 0x14f   : > { %v456_v5 = vsel %vm449_vm7, %v1072_v19, %v1111_v55  ;;  %v425_v34 = vsel %vm418_vm0, %v976_v8, %v977_v39  ;;  %v659_v49 = vunpack.c.l.bf16 %v650_v36  ;;  %v660_v56 = vunpack.c.h.bf16 %v650_v36 }
 0x150   : > { %767 = vmatpush.bf16.msra.mxu3 %v674_v62  ;;  %780 = vmatpush.bf16.msrb.mxu0 %v675_v31  ;;  %v664_v12 = vpack.c.bf16 %v456_v5, %v425_v34  ;;  %v665_v55 = vpack.c.bf16 %v455_v48, %v1423_v42  ;;  %v658_v39 = vunpack.c.h.bf16 %v1574_v7 }
 0x151   : > { %793 = vmatpush.bf16.msrb.mxu1 %v676_v15  ;;  %806 = vmatpush.bf16.msrb.mxu2 %v677_v23 }
 0x152   : > { %v1711_v50 = vpop.permute.xlu0 %1139  ;;  %v1115_v19 = vpop.permute.xlu1 %1114 }
 0x153   : > { %v1142_v18 = vunpack.i.h.bf16 %v1711_v50  ;;  %v1141_v2 = vunpack.i.l.bf16 %v1711_v50  ;;  %v1117_v41 = vunpack.i.h.bf16 %v1115_v19  ;;  %v1116_v10 = vunpack.i.l.bf16 %v1115_v19  ;;  %v1150_v63 = vpop.permute.xlu2 %1149 }
 0x154   : > { %768 = vmatpush.bf16.msra.mxu3 %v664_v12  ;;  %781 = vmatpush.bf16.msrb.mxu0 %v665_v55  ;;  %v1151_v26 = vunpack.i.l.bf16 %v1150_v63  ;;  %v1857_v50 = vunpack.i.h.bf16 %v1361_v21 }
 0x155   : > { %v645_v42 = vsel %vm635_vm1, %v1117_v41, %v991_v33  ;;  %v636_v8 = vsel %vm635_vm1, %v1116_v10, %v1117_v41  ;;  %v454_v47 = vsel %vm449_vm7, %v1112_v35, %v1141_v2  ;;  %v453_v17 = vsel %vm449_vm7, %v1141_v2, %v1142_v18 }
 0x156   : > { %v710_v4 = vpack.c.bf16 %v660_v56, %v645_v42  ;;  %v709_v22 = vpack.c.bf16 %v659_v49, %v636_v8  ;;  %v666_v40 = vpack.c.bf16 %v454_v47, %v423_v37  ;;  %v667_v7 = vpack.c.bf16 %v453_v17, %v1375_v25 }
 0x157   : > { %941 = vmatmul.msk.bf16.vlgmr.msra.gmra.mxu3 %vm718_vm8, %v1552_v54  ;;  %942 = vmatmul.msk.bf16.vlgmr.msrb.gmra.mxu0 %vm718_vm8, %v1552_v54  ;;  %v637_v28 = vsel %vm635_vm1, %v1077_v6, %v1116_v10  ;;  %v1137_v33 = vunpack.i.h.bf16 %v1135_v1  ;;  %v1136_v35 = vunpack.i.l.bf16 %v1135_v1  ;;  %v1152_v56 = vunpack.i.h.bf16 %v1150_v63 }
 0x158   : > { %794 = vmatpush.bf16.msrb.mxu1 %v666_v40  ;;  %807 = vmatpush.bf16.msrb.mxu2 %v667_v7  ;;  %v708_v32 = vpack.c.bf16 %v658_v39, %v637_v28 }
 0x159   : > { %829 = vmatpush.bf16.msra.mxu0 %v709_v22  ;;  %v606_v6 = vsel %vm604_vm3, %v1092_v53, %v1136_v35  ;;  %v605_v23 = vsel %vm604_vm3, %v1136_v35, %v1137_v33  ;;  %v614_v30 = vsel %vm604_vm3, %v1137_v33, %v1011_v24 }
 0x15a   : > { %816 = vmatpush.bf16.msrb.mxu3 %v708_v32  ;;  %v506_v25 = vpop.permute.xlu0 %505  ;;  %v1130_v62 = vpop.permute.xlu1 %1129 }
 0x15b   : > { %v1132_v31 = vunpack.i.h.bf16 %v1130_v62  ;;  %v1131_v15 = vunpack.i.l.bf16 %v1130_v62  ;;  %943 = vmatmul.msk.bf16.vlgmr.msrb.gmra.mxu1 %vm718_vm8, %v1552_v54  ;;  %944 = vmatmul.msk.bf16.vlgmr.msrb.gmra.mxu2 %vm718_vm8, %v1552_v54  ;;  %v444_v12 = vpop.permute.xlu2 %443  ;;  %v514_v59 = vsel %vm511_vm6, %v1127_v52, %v506_v25  ;;  %v1856_v52 = vunpack.i.l.bf16 %v1361_v21 }
 0x15c   : > { %842 = vmatpush.bf16.msra.mxu1 %v710_v4  ;;  %v452_v38 = vsel %vm449_vm7, %v1142_v18, %v444_v12 }
 0x15d   : > { %v575_v36 = vsel %vm573_vm2, %v1087_v60, %v1131_v15  ;;  %v574_v5 = vsel %vm573_vm2, %v1131_v15, %v1132_v31  ;;  %v583_v48 = vsel %vm573_vm2, %v1132_v31, %v1001_v11 }
 0x15e   : > { %v698_v53 = vpack.c.bf16 %v606_v6, %v575_v36  ;;  %v699_v1 = vpack.c.bf16 %v605_v23, %v574_v5  ;;  %v700_v34 = vpack.c.bf16 %v614_v30, %v583_v48 }
 0x160   : > { %817 = vmatpush.bf16.msrb.mxu3 %v698_v53  ;;  %830 = vmatpush.bf16.msra.mxu0 %v699_v1 }
 0x161   : > { %843 = vmatpush.bf16.msra.mxu1 %v700_v34 }
 0x162   : > { %v1145_v0 = vpop.permute.xlu1 %1144  ;;  %v508_v19 = vpop.permute.xlu0 %507 }
 0x163   : > { %v1147_v60 = vunpack.i.h.bf16 %v1145_v0  ;;  %v1146_v49 = vunpack.i.l.bf16 %v1145_v0  ;;  %v512_v44 = vsel %vm511_vm6, %v508_v19, %v1051_v13 }
 0x165   : > { %v544_v11 = vsel %vm542_vm4, %v1107_v61, %v1146_v49  ;;  %v543_v14 = vsel %vm542_vm4, %v1146_v49, %v1147_v60  ;;  %v552_v24 = vsel %vm542_vm4, %v1147_v60, %v1021_v16  ;;  %v513_v61 = vsel %vm511_vm6, %v506_v25, %v508_v19 }
 0x166   : > { %v688_v55 = vpack.c.bf16 %v544_v11, %v1325_v9  ;;  %v689_v2 = vpack.c.bf16 %v543_v14, %v1280_v58  ;;  %v690_v41 = vpack.c.bf16 %v552_v24, %v1295_v3  ;;  %v482_v58 = vsel %vm480_vm5, %v1151_v26, %v1152_v56 }
 0x167   : > { %v483_v3 = vsel %vm480_vm5, %v1122_v29, %v1151_v26  ;;  %v481_v9 = vsel %vm480_vm5, %v1152_v56, %v1041_v45  ;;  %v679_v16 = vpack.c.bf16 %v513_v61, %v482_v58  ;;  %v446_v45 = vpop.permute.xlu2 %445 }
 0x168   : > { %818 = vmatpush.bf16.msrb.mxu3 %v688_v55  ;;  %831 = vmatpush.bf16.msra.mxu0 %v689_v2  ;;  %v678_v51 = vpack.c.bf16 %v514_v59, %v483_v3  ;;  %v680_v13 = vpack.c.bf16 %v512_v44, %v481_v9  ;;  %v450_v37 = vsel %vm449_vm7, %v446_v45, %v1071_v57 }
 0x169   : > { %844 = vmatpush.bf16.msra.mxu1 %v690_v41  ;;  %v451_v39 = vsel %vm449_vm7, %v444_v12, %v446_v45 }
 0x16a   : > { %v411_v46 = vpop.permute.xlu1 %410  ;;  %v716_v21 = vpop.permute.xlu0 %715 }
 0x16b   : > { %v421_v10 = vsel %vm418_vm0, %v1856_v52, %v411_v46 }
 0x16c   : > { %819 = vmatpush.bf16.msrb.mxu3 %v678_v51  ;;  %832 = vmatpush.bf16.msra.mxu0 %v679_v16  ;;  %v668_v27 = vpack.c.bf16 %v452_v38, %v421_v10 }
 0x16d   : > { %845 = vmatpush.bf16.msra.mxu1 %v680_v13 }
 0x170   : > { %820 = vmatpush.bf16.msrb.mxu3 %v668_v27 }
 0x172   : > { %v413_v29 = vpop.permute.xlu1 %412 }
 0x173   : > { %v419_v18 = vsel %vm418_vm0, %v413_v29, %v1857_v50  ;;  %v420_v42 = vsel %vm418_vm0, %v411_v46, %v413_v29  ;;  %945 = vmatmul.msk.bf16.vlgmr.msrb.gmra.mxu3 %vm718_vm8, %v1552_v54 }
 0x174   : > { %v669_v8 = vpack.c.bf16 %v451_v39, %v420_v42  ;;  %v670_v47 = vpack.c.bf16 %v450_v37, %v419_v18 }
 0x176   : > { %833 = vmatpush.bf16.msra.mxu0 %v669_v8  ;;  %846 = vmatpush.bf16.msra.mxu1 %v670_v47 }
 0x179   : > { %946 = vmatmul.msk.bf16.vlgmr.msra.gmra.mxu0 %vm718_vm8, %v1552_v54  ;;  %947 = vmatmul.msk.bf16.vlgmr.msra.gmra.mxu1 %vm718_vm8, %v1552_v54 }
 0x1b0   : > { %v744_v20 = vpop.f32.mrf.mxu1 }
 0x1b1   : > { %v745_v43 = vadd.f32 %v744_v20, %v716_v21 }
 0x1b3   : > { %853 = vst [vmem:[%s1831_s13 + $0x8] sm:$0xff] %v745_v43 }
 0x1b8   : > { %v746_v57 = vpop.f32.mrf.mxu1 }
 0x1c0   : > { %v731_v17 = vpop.f32.mrf.mxu0 }
 0x1c1   : > { %v732_v4 = vadd.f32 %v731_v17, %v716_v21 }
 0x1c3   : > { %852 = vst [vmem:[%s1831_s13] sm:$0xff] %v732_v4 }
 0x1c6   : > { %v757_v54 = vpop.f32.mrf.mxu2 }
 0x1c7   : > { %v758_v22 = vadd.f32 %v757_v54, %v716_v21 }
 0x1c8   : > { %v733_v40 = vpop.f32.mrf.mxu0 }
 0x1c9   : > { %854 = vst [vmem:[%s1831_s13 + $0x10] sm:$0xff] %v758_v22 }
 0x1ce   : > { %v759_v7 = vpop.f32.mrf.mxu2 }
 0x1d4   : > { %v783_v28 = vpop.f32.mrf.mxu0 }
 0x1d5   : > { %v784_v33 = vadd.f32 %v783_v28, %v716_v21 }
 0x1d7   : > { %856 = vst [vmem:[%s1831_s13 + $0x20] sm:$0xff] %v784_v33 }
 0x1d8   : > { %v796_v35 = vpop.f32.mrf.mxu1 }
 0x1d9   : > { %v797_v32 = vadd.f32 %v796_v35, %v716_v21 }
 0x1da   : > { %v770_v25 = vpop.f32.mrf.mxu3 }
 0x1db   : > { %857 = vst [vmem:[%s1831_s13 + $0x28] sm:$0xff] %v797_v32  ;;  %v771_v62 = vadd.f32 %v770_v25, %v716_v21 }
 0x1dc   : > { %v785_v31 = vpop.f32.mrf.mxu0 }
 0x1dd   : > { %855 = vst [vmem:[%s1831_s13 + $0x18] sm:$0xff] %v771_v62 }
 0x1de   : > { %v809_v15 = vpop.f32.mrf.mxu2 }
 0x1df   : > { %v810_v63 = vadd.f32 %v809_v15, %v716_v21 }
 0x1e0   : > { %v798_v6 = vpop.f32.mrf.mxu1 }
 0x1e1   : > { %858 = vst [vmem:[%s1831_s13 + $0x30] sm:$0xff] %v810_v63 }
 0x1e2   : > { %v772_v23 = vpop.f32.mrf.mxu3 }
 0x1e6   : > { %v811_v36 = vpop.f32.mrf.mxu2 }
 0x1f6   : > { %v822_v5 = vpop.f32.mrf.mxu3  ;;  %v835_v48 = vpop.f32.mrf.mxu0 }
 0x1f7   : > { %v823_v30 = vadd.f32 %v822_v5, %v716_v21  ;;  %v836_v53 = vadd.f32 %v835_v48, %v716_v21  ;;  %v848_v1 = vpop.f32.mrf.mxu1 }
 0x1f8   : > { %v849_v34 = vadd.f32 %v848_v1, %v716_v21 }
 0x1f9   : > { %859 = vst [vmem:[%s1831_s13 + $0x38] sm:$0xff] %v823_v30 }
 0x1fa   : > { %860 = vst [vmem:[%s1831_s13 + $0x40] sm:$0xff] %v836_v53 }
 0x1fb   : > { %861 = vst [vmem:[%s1831_s13 + $0x48] sm:$0xff] %v849_v34 }
 0x1fe   : > { %v824_v0 = vpop.f32.mrf.mxu3  ;;  %v837_v60 = vpop.f32.mrf.mxu0 }
 0x1ff   : > { %v850_v49 = vpop.f32.mrf.mxu1 }
 0x200 PF: > { %s17_s24 = sadd.s32 1, %s1159_s24  }
 0x201   : > { %p14_p4 = scmp.ge.s32.totalorder %s17_s24, 4  }
 0x203   :  { %16 = sbr.rel (!%p14_p4) target bundleno = 1 (0x1), region = 81 }

</bundles_post_ra>
